<compile_context>
chip_gen: v7x
topology: tpu7x:2x2x1
jax: 0.10.0
libtpu: 0.0.40
codegen_flags: <defaults>
</compile_context>

<pallas_src>
import jax
import jax.numpy as jnp
from jax.experimental import pallas as pl
from jax.experimental.pallas import tpu as pltpu

EPS = 1e-5


def _fused_kernel(s_ref, x109_ref, x103_ref, w_ref, gb_ref, out_ref):
    # s_ref:    (1, Cin)   gate logits over input channels (x113)
    # x109_ref: (Cin, HW)  gated input, full-resident across the Cout grid
    # x103_ref: (Ct, HW)   residual tile (this step's Cout rows)
    # w_ref:    (Ct, Cin)  1x1 conv weight tile (Cout, Cin)
    # gb_ref:   (Ct, 2)    packed (gamma, beta)
    # out_ref:  (Ct, HW)

    # Fold the per-input-channel sigmoid gate into the weight: scales the
    # small (Ct, Cin) tile instead of the big (Cin, HW) activation slab.
    gate = jax.nn.sigmoid(s_ref[...])                       # (1, Cin)
    w_scaled = w_ref[...] * gate                            # (Ct, Cin)

    # 1x1 conv == channel matmul on the MXU.
    y = jnp.dot(w_scaled, x109_ref[...],
                preferred_element_type=jnp.float32)         # (Ct, HW)

    # BatchNorm2d (training): biased per-channel stats over N*H*W (N == 1).
    # One pass over y: sum and sum-of-squares; var clamped at 0 (f32 accum).
    inv_hw = 1.0 / y.shape[1]
    mean = jnp.sum(y, axis=1, keepdims=True) * inv_hw       # (Ct, 1)
    ex2 = jnp.sum(y * y, axis=1, keepdims=True) * inv_hw    # (Ct, 1)
    var = jnp.maximum(ex2 - mean * mean, 0.0)

    gamma = gb_ref[:, 0:1]
    beta = gb_ref[:, 1:2]
    scale = jax.lax.rsqrt(var + EPS) * gamma                # (Ct, 1)
    bias = beta - mean * scale                              # (Ct, 1)
    out_ref[...] = x103_ref[...] + y * scale + bias


def _pick_cout_tile(c):
    # Aim for ~3 pipelined Cout tiles; tile rows must be a multiple of 8.
    for n in (3, 2):
        if c % n == 0 and (c // n) % 8 == 0:
            return c // n
    return c


def fused_sigmoid_mul_conv_bn_add(x113, x109, x103, w, gamma, beta):
    """Inputs in PyTorch NCHW layout.

    x113: (1, C, 1, 1), x109/x103: (1, C, H, W), w: (Cout, Cin, 1, 1),
    gamma/beta: (Cout,). Returns (1, Cout, H, W).
    """
    N, C, H, W = x109.shape
    assert N == 1, "kernel assumes batch size 1 (matches the module spec)"
    HW = H * W
    Cout = w.shape[0]

    # NCHW with N == 1 -> (C, HW): pure reshapes, zero data movement.
    x109_2d = x109.reshape(C, HW)
    x103_2d = x103.reshape(Cout, HW)
    s_2d = x113.reshape(1, C)                 # lane-major gate logits
    w_2d = w.reshape(Cout, C)                 # (Cout, Cin)
    gb = jnp.stack([gamma, beta], axis=1)     # (Cout, 2) packed BN affine

    tc = _pick_cout_tile(Cout)
    grid = (Cout // tc,)

    out_2d = pl.pallas_call(
        _fused_kernel,
        out_shape=jax.ShapeDtypeStruct((Cout, HW), jnp.float32),
        grid=grid,
        in_specs=[
            pl.BlockSpec((1, C), lambda i: (0, 0)),    # gate logits (resident)
            pl.BlockSpec((C, HW), lambda i: (0, 0)),   # x109 (resident)
            pl.BlockSpec((tc, HW), lambda i: (i, 0)),  # x103 residual tile
            pl.BlockSpec((tc, C), lambda i: (i, 0)),   # weight tile
            pl.BlockSpec((tc, 2), lambda i: (i, 0)),   # packed gamma/beta
        ],
        out_specs=pl.BlockSpec((tc, HW), lambda i: (i, 0)),
        # reuse x103's HBM buffer for the output (same tiling on both sides,
        # each aliased tile is fully read before its writeback)
        input_output_aliases={2: 0},
        compiler_params=pltpu.CompilerParams(
            dimension_semantics=("parallel",)),
    )(s_2d, x109_2d, x103_2d, w_2d, gb)

    # (Cout, HW) -> NCHW, a free reshape for N == 1.
    return out_2d.reshape(N, Cout, H, W)


def _reference(x113, x109, x103, w, gamma, beta):
    gate = jax.nn.sigmoid(x113)                       # (1, C, 1, 1)
    z = gate * x109                                   # (1, C, H, W)
    y = jnp.einsum('nchw,oc->nohw', z, w.reshape(w.shape[0], w.shape[1]))
    mean = jnp.mean(y, axis=(0, 2, 3), keepdims=True)
    var = jnp.mean((y - mean) ** 2, axis=(0, 2, 3), keepdims=True)
    y_norm = (y - mean) / jnp.sqrt(var + EPS)
    y_norm = y_norm * gamma.reshape(1, -1, 1, 1) + beta.reshape(1, -1, 1, 1)
    return x103 + y_norm


# TODO(synk): PyTorch BatchNorm2d (training) also updates running_mean /
# running_var; those running-stat side effects are not emitted here.

if __name__ == "__main__":
    N, C, H, W = 1, 216, 28, 28
    key = jax.random.PRNGKey(0)
    k1, k2, k3, k4, k5, k6 = jax.random.split(key, 6)

    x113 = jax.random.normal(k1, (N, C, 1, 1), dtype=jnp.float32)
    x109 = jax.random.normal(k2, (N, C, H, W), dtype=jnp.float32)
    x103 = jax.random.normal(k3, (N, C, H, W), dtype=jnp.float32)

    # Conv2d(216, 216, 1x1, bias=False) weight; BatchNorm affine params
    # (perturbed from the PyTorch default init to exercise the affine path).
    w = jax.random.normal(k4, (C, C, 1, 1), dtype=jnp.float32) * 0.05
    gamma = 1.0 + 0.1 * jax.random.normal(k5, (C,), dtype=jnp.float32)
    beta = 0.1 * jax.random.normal(k6, (C,), dtype=jnp.float32)

    # Compute the reference first: x103 is donated to the fused kernel below.
    ref = jax.block_until_ready(_reference(x113, x109, x103, w, gamma, beta))

    fused = jax.jit(fused_sigmoid_mul_conv_bn_add, donate_argnums=(2,))
    out = jax.block_until_ready(fused(x113, x109, x103, w, gamma, beta))

    assert out.shape == (N, C, H, W)
    assert jnp.allclose(out, ref, atol=1e-3, rtol=1e-3)

    print("KERNEL_OK")
</pallas_src>

<mosaic_0001>
module attributes {stable_mosaic.version = 11 : i64} {
  func.func @_fused_kernel(%arg0: i32, %arg1: memref<1x216xf32, #tpu.memory_space<vmem>>, %arg2: memref<216x784xf32, #tpu.memory_space<vmem>>, %arg3: memref<72x784xf32, #tpu.memory_space<vmem>>, %arg4: memref<72x216xf32, #tpu.memory_space<vmem>>, %arg5: memref<72x2xf32, #tpu.memory_space<vmem>>, %arg6: memref<72x784xf32, #tpu.memory_space<vmem>>) attributes {dimension_semantics = [#tpu.dimension_semantics<parallel>], iteration_bounds = array<i64: 3>, scalar_prefetch = 0 : i64, scratch_operands = 0 : i64, tpu.core_type = #tpu.core_type<tc>, window_params = [{pipeline_mode = #tpu.pipeline_mode<synchronous>, transform_indices = @transform_0, window_bounds = array<i64: 1, 216>}, {pipeline_mode = #tpu.pipeline_mode<synchronous>, transform_indices = @transform_1, window_bounds = array<i64: 216, 784>}, {transform_indices = @transform_2, window_bounds = array<i64: 72, 784>}, {transform_indices = @transform_3, window_bounds = array<i64: 72, 216>}, {transform_indices = @transform_4, window_bounds = array<i64: 72, 2>}, {transform_indices = @transform_5, window_bounds = array<i64: 72, 784>}]} {
    %c0 = arith.constant 0 : index
    %c0_0 = arith.constant 0 : index
    %0 = vector.load %arg1[%c0, %c0_0] : memref<1x216xf32, #tpu.memory_space<vmem>>, vector<1x216xf32>
    %1 = arith.negf %0 : vector<1x216xf32>
    %2 = math.exp %1 : vector<1x216xf32>
    %cst = arith.constant 1.000000e+00 : f32
    %3 = vector.broadcast %cst : f32 to vector<1x216xf32>
    %4 = arith.addf %3, %2 : vector<1x216xf32>
    %5 = arith.divf %3, %4 : vector<1x216xf32>
    %c0_1 = arith.constant 0 : index
    %c0_2 = arith.constant 0 : index
    %6 = vector.load %arg4[%c0_1, %c0_2] : memref<72x216xf32, #tpu.memory_space<vmem>>, vector<72x216xf32>
    %7 = vector.broadcast %5 : vector<1x216xf32> to vector<72x216xf32>
    %8 = arith.mulf %6, %7 : vector<72x216xf32>
    %c0_3 = arith.constant 0 : index
    %c0_4 = arith.constant 0 : index
    %9 = vector.load %arg2[%c0_3, %c0_4] : memref<216x784xf32, #tpu.memory_space<vmem>>, vector<216x784xf32>
    %cst_5 = arith.constant dense<0.000000e+00> : vector<72x784xf32>
    %10 = tpu.matmul %8, %9, %cst_5 {dimension_numbers = #tpu.dot_dimension_numbers<[1], [0], [0], [1], [0, 0, 1, 1], [], []>} : vector<72x216xf32>, vector<216x784xf32>, vector<72x784xf32> -> vector<72x784xf32>
    %cst_6 = arith.constant dense<0.000000e+00> : vector<72xf32>
    %11 = vector.multi_reduction <add>, %10, %cst_6 [1] : vector<72x784xf32> to vector<72xf32>
    %12 = vector.shape_cast %11 : vector<72xf32> to vector<72x1xf32>
    %cst_7 = arith.constant 0.00127551018 : f32
    %13 = vector.broadcast %cst_7 : f32 to vector<72x1xf32>
    %14 = arith.mulf %12, %13 : vector<72x1xf32>
    %15 = arith.mulf %10, %10 : vector<72x784xf32>
    %cst_8 = arith.constant dense<0.000000e+00> : vector<72xf32>
    %16 = vector.multi_reduction <add>, %15, %cst_8 [1] : vector<72x784xf32> to vector<72xf32>
    %17 = vector.shape_cast %16 : vector<72xf32> to vector<72x1xf32>
    %cst_9 = arith.constant 0.00127551018 : f32
    %18 = vector.broadcast %cst_9 : f32 to vector<72x1xf32>
    %19 = arith.mulf %17, %18 : vector<72x1xf32>
    %20 = arith.mulf %14, %14 : vector<72x1xf32>
    %21 = arith.subf %19, %20 : vector<72x1xf32>
    %cst_10 = arith.constant 0.000000e+00 : f32
    %22 = vector.broadcast %cst_10 : f32 to vector<72x1xf32>
    %23 = arith.maximumf %21, %22 : vector<72x1xf32>
    %c0_11 = arith.constant 0 : index
    %c0_12 = arith.constant 0 : index
    %24 = vector.load %arg5[%c0_11, %c0_12] : memref<72x2xf32, #tpu.memory_space<vmem>>, vector<72x1xf32>
    %c0_13 = arith.constant 0 : index
    %c1 = arith.constant 1 : index
    %25 = vector.load %arg5[%c0_13, %c1] : memref<72x2xf32, #tpu.memory_space<vmem>>, vector<72x1xf32>
    %cst_14 = arith.constant 9.99999974E-6 : f32
    %26 = vector.broadcast %cst_14 : f32 to vector<72x1xf32>
    %27 = arith.addf %23, %26 : vector<72x1xf32>
    %28 = math.rsqrt %27 : vector<72x1xf32>
    %29 = arith.mulf %28, %24 : vector<72x1xf32>
    %30 = arith.mulf %14, %29 : vector<72x1xf32>
    %31 = arith.subf %25, %30 : vector<72x1xf32>
    %c0_15 = arith.constant 0 : index
    %c0_16 = arith.constant 0 : index
    %32 = vector.load %arg3[%c0_15, %c0_16] : memref<72x784xf32, #tpu.memory_space<vmem>>, vector<72x784xf32>
    %33 = vector.broadcast %29 : vector<72x1xf32> to vector<72x784xf32>
    %34 = arith.mulf %10, %33 : vector<72x784xf32>
    %35 = arith.addf %32, %34 : vector<72x784xf32>
    %36 = vector.broadcast %31 : vector<72x1xf32> to vector<72x784xf32>
    %37 = arith.addf %35, %36 : vector<72x784xf32>
    %c0_17 = arith.constant 0 : index
    %c0_18 = arith.constant 0 : index
    %38 = vector.load %arg6[%c0_17, %c0_18] : memref<72x784xf32, #tpu.memory_space<vmem>>, vector<72x784xf32>
    tpu.vector_store %arg6[%c0_17, %c0_18], %37 {strides = array<i32>} : memref<72x784xf32, #tpu.memory_space<vmem>>, vector<72x784xf32>,
    return
  }
  func.func @transform_0(%arg0: i32) -> (i32, i32) {
    %c0_i32 = arith.constant 0 : i32
    %c0_i32_0 = arith.constant 0 : i32
    %c0_i32_1 = arith.constant 0 : i32
    return %c0_i32, %c0_i32_0 : i32, i32
  }
  func.func @transform_1(%arg0: i32) -> (i32, i32) {
    %c0_i32 = arith.constant 0 : i32
    %c0_i32_0 = arith.constant 0 : i32
    %c0_i32_1 = arith.constant 0 : i32
    return %c0_i32, %c0_i32_0 : i32, i32
  }
  func.func @transform_2(%arg0: i32) -> (i32, i32) {
    %c0_i32 = arith.constant 0 : i32
    %c0_i32_0 = arith.constant 0 : i32
    return %arg0, %c0_i32 : i32, i32
  }
  func.func @transform_3(%arg0: i32) -> (i32, i32) {
    %c0_i32 = arith.constant 0 : i32
    %c0_i32_0 = arith.constant 0 : i32
    return %arg0, %c0_i32 : i32, i32
  }
  func.func @transform_4(%arg0: i32) -> (i32, i32) {
    %c0_i32 = arith.constant 0 : i32
    %c0_i32_0 = arith.constant 0 : i32
    return %arg0, %c0_i32 : i32, i32
  }
  func.func @transform_5(%arg0: i32) -> (i32, i32) {
    %c0_i32 = arith.constant 0 : i32
    %c0_i32_0 = arith.constant 0 : i32
    return %arg0, %c0_i32 : i32, i32
  }
}

</mosaic_0001>

<bundles_post_ra>
// kernel: fused_sigmoid_mul_conv_bn_add.1
= control target key start
LH: loop header
LB: loop body
LE: loop exit
PB: predicated region body
PF: predicated region fallthrough
CT: control target
= control target key end

     0   :  { %s2194_s18 = smov 0   ;;  %s4016_s0 = inlined_call_operand.vmem [shape: f32[1,216], index: 0, kind: input, shape index: {}]   ;;  %s4017_s1 = inlined_call_operand.vmem [shape: f32[216,784], index: 1, kind: input, shape index: {}]   ;;  %s4018_s2 = inlined_call_operand.vmem [shape: f32[216,784], index: 2, kind: input, shape index: {}, may-alias: {2,5}]   ;;  %s4019_s3 = inlined_call_operand.vmem [shape: f32[216,216], index: 3, kind: input, shape index: {}]   ;;  %s4020_s4 = inlined_call_operand.vmem [shape: f32[216,2], index: 4, kind: input, shape index: {}]   ;;  %s4021_s5 = inlined_call_operand.vmem [shape: f32[216,784], index: 5, kind: output, shape index: {}, may-alias: {2,5}]  }
   0x1 LB: > { %s1866_s19 = sadd.s32 4294967295, %s2157_s18   ;;  %p1870_p0 = scmp.ge.s32.totalorder %s2157_s18, 1  ;;  %s2157_s18 = sphi %s2194_s18, %s15_s18  }
   0x2   : > { %p212_p1 = scmp.lt.s32.totalorder %s2157_s18, 4 }
   0x4   : > { %p213_p2 = pnand %p1870_p0, %p212_p1 }
   0x6   : > { %216 = sbr.rel (%p213_p2) target bundleno = 802 (0x322), region = 40 }
   0xd   : > { %v335_v0 = vld [vmem:[%s4017_s1 + $0x8] sm:$0xff]  ;;  %v342_v1 = vld [vmem:[%s4017_s1 + $0x40] sm:$0xff]  ;;  %v341_v4 = vld [vmem:[%s4017_s1 + $0x38] sm:$0xff]  ;;  %s253_s30 = smul.u32 9, %s1866_s19  ;;  %vm523_vm0 = vcmask 719872   ;;  %vm1023_vm1 = vcmask 130048  }
   0xe   : > { %v334_v2 = vld [vmem:[%s4017_s1] sm:$0xff]  ;;  %v1916_v3 = vpack.c.bf16 %v342_v1, %v335_v0  ;;  %v337_v5 = vld [vmem:[%s4017_s1 + $0x18] sm:$0xff]  ;;  %v344_v6 = vld [vmem:[%s4017_s1 + $0x50] sm:$0xff]  ;;  %s2162_s21 = smov 1  }
   0xf   : > { %v1918_v7 = vpack.c.bf16 %v341_v4, %v334_v2  ;;  %v1968_v8 = vpack.c.bf16 %v344_v6, %v337_v5  ;;  %v349_v9 = vld [vmem:[%s4017_s1 + $0x78] sm:$0xff]  ;;  %v356_v10 = vld [vmem:[%s4017_s1 + $0xb0] sm:$0xff]  ;;  %v343_v13 = vld [vmem:[%s4017_s1 + $0x48] sm:$0xff]  ;;  %p254_p3 = scmp.lt.s32.totalorder %s253_s30, 26 }
  0x10   : > { %v336_v11 = vld [vmem:[%s4017_s1 + $0x10] sm:$0xff]  ;;  %1917 = vmatprep.subr.bf16.mxu0 %v1916_v3  ;;  %v1920_v12 = vpack.c.bf16 %v356_v10, %v349_v9  ;;  %v355_v15 = vld [vmem:[%s4017_s1 + $0xa8] sm:$0xff]  ;;  %v358_v19 = vld [vmem:[%s4017_s1 + $0xc0] sm:$0xff] }
  0x11   : > { %v348_v14 = vld [vmem:[%s4017_s1 + $0x70] sm:$0xff]  ;;  %1919 = vmatpush1.bf16.msra.mxu0 %v1918_v7  ;;  %1969 = vmatprep.subr.bf16.mxu1 %v1968_v8  ;;  %v1970_v16 = vpack.c.bf16 %v343_v13, %v336_v11  ;;  %v351_v18 = vld [vmem:[%s4017_s1 + $0x88] sm:$0xff]  ;;  %v370_v22 = vld [vmem:[%s4017_s1 + $0x120] sm:$0xff]  ;;  %s4202_s30 = smov (!%p254_p3, %s253_s30), 26 }
  0x12   : > { %v1922_v17 = vpack.c.bf16 %v355_v15, %v348_v14  ;;  %v363_v20 = vld [vmem:[%s4017_s1 + $0xe8] sm:$0xff]  ;;  %1921 = vmatprep.subr.bf16.mxu0 %v1920_v12  ;;  %v1972_v21 = vpack.c.bf16 %v358_v19, %v351_v18  ;;  %v350_v23 = vld [vmem:[%s4017_s1 + $0x80] sm:$0xff]  ;;  %v357_v24 = vld [vmem:[%s4017_s1 + $0xb8] sm:$0xff]  ;;  %s1915_s9 = sshll.u32 %s4202_s30, 4  ;;  %s1874_s15 = sshll.u32 %s4202_s30, 3 }
  0x13   : > { %1971 = vmatpush1.bf16.msra.mxu1 %v1970_v16  ;;  %v1924_v25 = vpack.c.bf16 %v370_v22, %v363_v20  ;;  %v1974_v26 = vpack.c.bf16 %v357_v24, %v350_v23  ;;  %v362_v27 = vld [vmem:[%s4017_s1 + $0xe0] sm:$0xff]  ;;  %v369_v28 = vld [vmem:[%s4017_s1 + $0x118] sm:$0xff]  ;;  %v372_v30 = vld [vmem:[%s4017_s1 + $0x130] sm:$0xff]  ;;  %s2543_s19 = scalar_lea.vmem %s4019_s3, %s1915_s9  ;;  %s3374_s20 = scalar_lea.vmem %s4020_s4, %s1874_s15 }
  0x14   : > { %v365_v29 = vld [vmem:[%s4017_s1 + $0xf8] sm:$0xff]  ;;  %1973 = vmatprep.subr.bf16.mxu1 %v1972_v21  ;;  %v384_v32 = vld [vmem:[%s4017_s1 + $0x190] sm:$0xff]  ;;  %v1926_v33 = vpack.c.bf16 %v369_v28, %v362_v27  ;;  %v371_v36 = vld [vmem:[%s4017_s1 + $0x128] sm:$0xff]  ;;  %s2111_s22 = smul.u32 56, %s4202_s30 }
  0x15   : > { %v377_v31 = vld [vmem:[%s4017_s1 + $0x158] sm:$0xff]  ;;  %1923 = vmatpush1.bf16.msra.mxu0 %v1922_v17  ;;  %v1976_v34 = vpack.c.bf16 %v372_v30, %v365_v29  ;;  %v364_v35 = vld [vmem:[%s4017_s1 + $0xf0] sm:$0xff]  ;;  %v383_v39 = vld [vmem:[%s4017_s1 + $0x188] sm:$0xff] }
  0x16   : > { %v376_v37 = vld [vmem:[%s4017_s1 + $0x150] sm:$0xff]  ;;  %1925 = vmatprep.subr.bf16.mxu0 %v1924_v25  ;;  %v1928_v38 = vpack.c.bf16 %v384_v32, %v377_v31  ;;  %v379_v40 = vld [vmem:[%s4017_s1 + $0x168] sm:$0xff]  ;;  %v386_v41 = vld [vmem:[%s4017_s1 + $0x1a0] sm:$0xff]  ;;  %v1978_v42 = vpack.c.bf16 %v371_v36, %v364_v35  ;;  %s3442_s25 = scalar_lea.vmem %s4018_s2, %s2111_s22  ;;  %s3588_s28 = scalar_lea.vmem %s4021_s5, %s2111_s22 }
  0x17   : > { %1975 = vmatpush1.bf16.msra.mxu1 %v1974_v26  ;;  %v391_v43 = vld [vmem:[%s4017_s1 + $0x1c8] sm:$0xff]  ;;  %v398_v44 = vld [vmem:[%s4017_s1 + $0x200] sm:$0xff]  ;;  %v1980_v45 = vpack.c.bf16 %v386_v41, %v379_v40  ;;  %v385_v47 = vld [vmem:[%s4017_s1 + $0x198] sm:$0xff]  ;;  %v1930_v48 = vpack.c.bf16 %v383_v39, %v376_v37 }
  0x18   : > { %1977 = vmatprep.subr.bf16.mxu1 %v1976_v34  ;;  %v378_v46 = vld [vmem:[%s4017_s1 + $0x160] sm:$0xff]  ;;  %v393_v49 = vld [vmem:[%s4017_s1 + $0x1d8] sm:$0xff]  ;;  %v400_v50 = vld [vmem:[%s4017_s1 + $0x210] sm:$0xff]  ;;  %v1932_v51 = vpack.c.bf16 %v398_v44, %v391_v43 }
  0x19   : > { %1927 = vmatpush1.bf16.msra.mxu0 %v1926_v33  ;;  %v390_v52 = vld [vmem:[%s4017_s1 + $0x1c0] sm:$0xff]  ;;  %v397_v53 = vld [vmem:[%s4017_s1 + $0x1f8] sm:$0xff]  ;;  %v1982_v54 = vpack.c.bf16 %v385_v47, %v378_v46  ;;  %v412_v56 = vld [vmem:[%s4017_s1 + $0x270] sm:$0xff]  ;;  %v1984_v57 = vpack.c.bf16 %v400_v50, %v393_v49 }
  0x1a   : > { %1929 = vmatprep.subr.bf16.mxu0 %v1928_v38  ;;  %v405_v55 = vld [vmem:[%s4017_s1 + $0x238] sm:$0xff]  ;;  %v392_v58 = vld [vmem:[%s4017_s1 + $0x1d0] sm:$0xff]  ;;  %v399_v59 = vld [vmem:[%s4017_s1 + $0x208] sm:$0xff]  ;;  %v1934_v60 = vpack.c.bf16 %v397_v53, %v390_v52 }
  0x1b   : > { %1979 = vmatpush1.bf16.msra.mxu1 %v1978_v42  ;;  %v407_v61 = vld [vmem:[%s4017_s1 + $0x248] sm:$0xff]  ;;  %v414_v62 = vld [vmem:[%s4017_s1 + $0x280] sm:$0xff]  ;;  %v1936_v63 = vpack.c.bf16 %v412_v56, %v405_v55  ;;  %v404_v0 = vld [vmem:[%s4017_s1 + $0x230] sm:$0xff]  ;;  %v1986_v2 = vpack.c.bf16 %v399_v59, %v392_v58 }
  0x1c   : > { %1981 = vmatprep.subr.bf16.mxu1 %v1980_v45  ;;  %v411_v1 = vld [vmem:[%s4017_s1 + $0x268] sm:$0xff]  ;;  %v426_v4 = vld [vmem:[%s4017_s1 + $0x2e0] sm:$0xff]  ;;  %v1988_v5 = vpack.c.bf16 %v414_v62, %v407_v61  ;;  %v413_v7 = vld [vmem:[%s4017_s1 + $0x278] sm:$0xff] }
  0x1d   : > { %1931 = vmatpush1.bf16.msra.mxu0 %v1930_v48  ;;  %v419_v3 = vld [vmem:[%s4017_s1 + $0x2a8] sm:$0xff]  ;;  %v406_v6 = vld [vmem:[%s4017_s1 + $0x240] sm:$0xff]  ;;  %v1938_v8 = vpack.c.bf16 %v411_v1, %v404_v0  ;;  %v421_v9 = vld [vmem:[%s4017_s1 + $0x2b8] sm:$0xff] }
  0x1e   : > { %1933 = vmatprep.subr.bf16.mxu0 %v1932_v51  ;;  %v428_v10 = vld [vmem:[%s4017_s1 + $0x2f0] sm:$0xff]  ;;  %v1940_v11 = vpack.c.bf16 %v426_v4, %v419_v3  ;;  %v418_v12 = vld [vmem:[%s4017_s1 + $0x2a0] sm:$0xff]  ;;  %v425_v13 = vld [vmem:[%s4017_s1 + $0x2d8] sm:$0xff]  ;;  %v1990_v14 = vpack.c.bf16 %v413_v7, %v406_v6 }
  0x1f   : > { %1983 = vmatpush1.bf16.msra.mxu1 %v1982_v54  ;;  %v433_v15 = vld [vmem:[%s4017_s1 + $0x318] sm:$0xff]  ;;  %v440_v16 = vld [vmem:[%s4017_s1 + $0x350] sm:$0xff]  ;;  %v1992_v17 = vpack.c.bf16 %v428_v10, %v421_v9  ;;  %v427_v19 = vld [vmem:[%s4017_s1 + $0x2e8] sm:$0xff]  ;;  %v1942_v20 = vpack.c.bf16 %v425_v13, %v418_v12 }
  0x20   : > { %1985 = vmatprep.subr.bf16.mxu1 %v1984_v57  ;;  %v420_v18 = vld [vmem:[%s4017_s1 + $0x2b0] sm:$0xff]  ;;  %v435_v21 = vld [vmem:[%s4017_s1 + $0x328] sm:$0xff]  ;;  %v442_v22 = vld [vmem:[%s4017_s1 + $0x360] sm:$0xff]  ;;  %v1944_v23 = vpack.c.bf16 %v440_v16, %v433_v15 }
  0x21   : > { %1935 = vmatpush1.bf16.msra.mxu0 %v1934_v60  ;;  %v432_v24 = vld [vmem:[%s4017_s1 + $0x310] sm:$0xff]  ;;  %v439_v25 = vld [vmem:[%s4017_s1 + $0x348] sm:$0xff]  ;;  %v1994_v26 = vpack.c.bf16 %v427_v19, %v420_v18  ;;  %v454_v28 = vld [vmem:[%s4017_s1 + $0x3c0] sm:$0xff]  ;;  %v1996_v29 = vpack.c.bf16 %v442_v22, %v435_v21 }
  0x22   : > { %1937 = vmatprep.subr.bf16.mxu0 %v1936_v63  ;;  %v447_v27 = vld [vmem:[%s4017_s1 + $0x388] sm:$0xff]  ;;  %v434_v30 = vld [vmem:[%s4017_s1 + $0x320] sm:$0xff]  ;;  %v441_v31 = vld [vmem:[%s4017_s1 + $0x358] sm:$0xff]  ;;  %v1946_v32 = vpack.c.bf16 %v439_v25, %v432_v24 }
  0x23   : > { %1987 = vmatpush1.bf16.msra.mxu1 %v1986_v2  ;;  %v449_v33 = vld [vmem:[%s4017_s1 + $0x398] sm:$0xff]  ;;  %v456_v34 = vld [vmem:[%s4017_s1 + $0x3d0] sm:$0xff]  ;;  %v1948_v35 = vpack.c.bf16 %v454_v28, %v447_v27  ;;  %v446_v36 = vld [vmem:[%s4017_s1 + $0x380] sm:$0xff]  ;;  %v1998_v38 = vpack.c.bf16 %v441_v31, %v434_v30 }
  0x24   : > { %1989 = vmatprep.subr.bf16.mxu1 %v1988_v5  ;;  %v453_v37 = vld [vmem:[%s4017_s1 + $0x3b8] sm:$0xff]  ;;  %v468_v40 = vld [vmem:[%s4017_s1 + $0x430] sm:$0xff]  ;;  %v2000_v41 = vpack.c.bf16 %v456_v34, %v449_v33  ;;  %v455_v43 = vld [vmem:[%s4017_s1 + $0x3c8] sm:$0xff]  ;;  %v306_v33 = vlaneseq }
  0x25   : > { %1939 = vmatpush1.bf16.msra.mxu0 %v1938_v8  ;;  %v461_v39 = vld [vmem:[%s4017_s1 + $0x3f8] sm:$0xff]  ;;  %v448_v42 = vld [vmem:[%s4017_s1 + $0x390] sm:$0xff]  ;;  %v1950_v44 = vpack.c.bf16 %v453_v37, %v446_v36  ;;  %v463_v45 = vld [vmem:[%s4017_s1 + $0x408] sm:$0xff] }
  0x26   : > { %1941 = vmatprep.subr.bf16.mxu0 %v1940_v11  ;;  %v470_v46 = vld [vmem:[%s4017_s1 + $0x440] sm:$0xff]  ;;  %v1952_v47 = vpack.c.bf16 %v468_v40, %v461_v39  ;;  %v460_v48 = vld [vmem:[%s4017_s1 + $0x3f0] sm:$0xff]  ;;  %v467_v49 = vld [vmem:[%s4017_s1 + $0x428] sm:$0xff]  ;;  %v2002_v50 = vpack.c.bf16 %v455_v43, %v448_v42  ;;  %v307_v39 = vshrl.u32 %v306_v33, 7  ;;  %v2159_v43 = vmov 0.0|0.0  }
  0x27   : > { %1991 = vmatpush1.bf16.msra.mxu1 %v1990_v14  ;;  %v475_v51 = vld [vmem:[%s4017_s1 + $0x468] sm:$0xff]  ;;  %v482_v52 = vld [vmem:[%s4017_s1 + $0x4a0] sm:$0xff]  ;;  %v2004_v53 = vpack.c.bf16 %v470_v46, %v463_v45  ;;  %v469_v55 = vld [vmem:[%s4017_s1 + $0x438] sm:$0xff]  ;;  %v1954_v57 = vpack.c.bf16 %v467_v49, %v460_v48 }
  0x28   : > { %1993 = vmatprep.subr.bf16.mxu1 %v1992_v17  ;;  %v462_v54 = vld [vmem:[%s4017_s1 + $0x400] sm:$0xff]  ;;  %v477_v58 = vld [vmem:[%s4017_s1 + $0x478] sm:$0xff]  ;;  %v484_v59 = vld [vmem:[%s4017_s1 + $0x4b0] sm:$0xff]  ;;  %v1956_v61 = vpack.c.bf16 %v482_v52, %v475_v51  ;;  %v308_v42 = vsub.s32 0, %v307_v39 }
  0x29   : > { %1943 = vmatpush1.bf16.msra.mxu0 %v1942_v20  ;;  %v280_v56 = vld [vmem:[%s4016_s0] sm:$0x3]  ;;  %v481_v63 = vld [vmem:[%s4017_s1 + $0x498] sm:$0xff]  ;;  %v2006_v0 = vpack.c.bf16 %v469_v55, %v462_v54  ;;  %v496_v2 = vld [vmem:[%s4017_s1 + $0x510] sm:$0xff]  ;;  %v2008_v3 = vpack.c.bf16 %v484_v59, %v477_v58 }
  0x2a   : > { %1945 = vmatprep.subr.bf16.mxu0 %v1944_v23  ;;  %v1876_v60 = vmul.f32 -1.442695, %v280_v56  ;;  %v474_v62 = vld [vmem:[%s4017_s1 + $0x460] sm:$0xff]  ;;  %v489_v1 = vld [vmem:[%s4017_s1 + $0x4d8] sm:$0xff]  ;;  %v476_v4 = vld [vmem:[%s4017_s1 + $0x470] sm:$0xff] }
  0x2b   : > { %1995 = vmatpush1.bf16.msra.mxu1 %v1994_v26  ;;  %v483_v5 = vld [vmem:[%s4017_s1 + $0x4a8] sm:$0xff]  ;;  %v1958_v6 = vpack.c.bf16 %v481_v63, %v474_v62  ;;  %v498_v8 = vld [vmem:[%s4017_s1 + $0x520] sm:$0xff]  ;;  %v1960_v9 = vpack.c.bf16 %v496_v2, %v489_v1  ;;  %v488_v10 = vld [vmem:[%s4017_s1 + $0x4d0] sm:$0xff] }
  0x2c   : > { %1997 = vmatprep.subr.bf16.mxu1 %v1996_v29  ;;  %2129 = vpow2.f32 %v1876_v60  ;;  %v491_v7 = vld [vmem:[%s4017_s1 + $0x4e8] sm:$0xff]  ;;  %v2010_v12 = vpack.c.bf16 %v483_v5, %v476_v4  ;;  %v510_v14 = vld [vmem:[%s4017_s1 + $0x580] sm:$0xff]  ;;  %v497_v17 = vld [vmem:[%s4017_s1 + $0x518] sm:$0xff] }
  0x2d   : > { %1947 = vmatpush1.bf16.msra.mxu0 %v1946_v32  ;;  %v495_v11 = vld [vmem:[%s4017_s1 + $0x508] sm:$0xff]  ;;  %v2012_v15 = vpack.c.bf16 %v498_v8, %v491_v7  ;;  %v490_v16 = vld [vmem:[%s4017_s1 + $0x4e0] sm:$0xff]  ;;  %v505_v19 = vld [vmem:[%s4017_s1 + $0x558] sm:$0xff] }
  0x2e   : > { %1949 = vmatprep.subr.bf16.mxu0 %v1948_v35  ;;  %v503_v13 = vld [vmem:[%s4017_s1 + $0x548] sm:$0xff]  ;;  %v1962_v18 = vpack.c.bf16 %v495_v11, %v488_v10  ;;  %v512_v20 = vld [vmem:[%s4017_s1 + $0x590] sm:$0xff]  ;;  %v502_v22 = vld [vmem:[%s4017_s1 + $0x540] sm:$0xff]  ;;  %v2014_v24 = vpack.c.bf16 %v497_v17, %v490_v16 }
  0x2f   : > { %1999 = vmatpush1.bf16.msra.mxu1 %v1998_v38  ;;  %v1964_v21 = vpack.c.bf16 %v510_v14, %v503_v13  ;;  %v509_v23 = vld [vmem:[%s4017_s1 + $0x578] sm:$0xff]  ;;  %v2016_v25 = vpack.c.bf16 %v512_v20, %v505_v19  ;;  %v504_v26 = vld [vmem:[%s4017_s1 + $0x550] sm:$0xff]  ;;  %v511_v27 = vld [vmem:[%s4017_s1 + $0x588] sm:$0xff] }
  0x30   : > { %2001 = vmatprep.subr.bf16.mxu1 %v2000_v41  ;;  %v1966_v29 = vpack.c.bf16 %v509_v23, %v502_v22  ;;  %v517_v31 = vld [vmem:[%s4017_s1 + $0x5b8] sm:$0xff]  ;;  %v2018_v32 = vpack.c.bf16 %v511_v27, %v504_v26  ;;  %v339_v34 = vld [vmem:[%s4017_s1 + $0x28] sm:$0xff]  ;;  %v346_v35 = vld [vmem:[%s4017_s1 + $0x60] sm:$0xff]  ;;  %v312_v41 = vsub.s32 1, %v307_v39 }
  0x31   : > { %1951 = vmatpush1.bf16.msra.mxu0 %v1950_v44  ;;  %v519_v36 = vld [vmem:[%s4017_s1 + $0x5c8] sm:$0xff]  ;;  %v516_v37 = vld [vmem:[%s4017_s1 + $0x5b0] sm:$0xff]  ;;  %v2020_v38 = vpack.c.bf16 %v346_v35, %v339_v34  ;;  %v518_v40 = vld [vmem:[%s4017_s1 + $0x5c0] sm:$0xff] }
  0x32   : > { %1953 = vmatprep.subr.bf16.mxu0 %v1952_v47  ;;  %v288_v44 = vld [vmem:[%s2543_s19 + $0x8] sm:$0xff]  ;;  %v287_v45 = vld [vmem:[%s2543_s19] sm:$0xff]  ;;  %v345_v48 = vld [vmem:[%s4017_s1 + $0x58] sm:$0xff] }
  0x33   : > { %2003 = vmatpush1.bf16.msra.mxu1 %v2002_v50  ;;  %v338_v46 = vld [vmem:[%s4017_s1 + $0x20] sm:$0xff]  ;;  %v340_v49 = vld [vmem:[%s4017_s1 + $0x30] sm:$0xff]  ;;  %v347_v50 = vld [vmem:[%s4017_s1 + $0x68] sm:$0xff] }
  0x34   : > { %2005 = vmatprep.subr.bf16.mxu1 %v2004_v53  ;;  %v353_v53 = vld [vmem:[%s4017_s1 + $0x98] sm:$0xff]  ;;  %v360_v54 = vld [vmem:[%s4017_s1 + $0xd0] sm:$0xff]  ;;  %v2022_v58 = vpack.c.bf16 %v345_v48, %v338_v46  ;;  %v2073_v59 = vpack.c.bf16 %v347_v50, %v340_v49  ;;  %v359_v63 = vld [vmem:[%s4017_s1 + $0xc8] sm:$0xff] }
  0x35   : > { %1955 = vmatpush1.bf16.msra.mxu0 %v1954_v57  ;;  %v290_v55 = vld [vmem:[%s2543_s19 + $0x18] sm:$0xff]  ;;  %v352_v60 = vld [vmem:[%s4017_s1 + $0x90] sm:$0xff]  ;;  %v2024_v62 = vpack.c.bf16 %v360_v54, %v353_v53  ;;  %v367_v2 = vld [vmem:[%s4017_s1 + $0x108] sm:$0xff] }
  0x36   : > { %1957 = vmatprep.subr.bf16.mxu0 %v1956_v61  ;;  %v2130_v28 = vpop.eup %2129  ;;  %v289_v61 = vld [vmem:[%s2543_s19 + $0x10] sm:$0xff]  ;;  %v361_v1 = vld [vmem:[%s4017_s1 + $0xd8] sm:$0xff]  ;;  %v2026_v7 = vpack.c.bf16 %v359_v63, %v352_v60  ;;  %v291_v10 = vld [vmem:[%s2543_s19 + $0x20] sm:$0xff] }
  0x37   : > { %2007 = vmatpush1.bf16.msra.mxu1 %v2006_v0  ;;  %v284_v30 = vadd.f32 1.0, %v2130_v28  ;;  %v354_v0 = vld [vmem:[%s4017_s1 + $0xa0] sm:$0xff]  ;;  %v368_v13 = vld [vmem:[%s4017_s1 + $0x110] sm:$0xff]  ;;  %v375_v14 = vld [vmem:[%s4017_s1 + $0x148] sm:$0xff] }
  0x38   : > { %2009 = vmatprep.subr.bf16.mxu1 %v2008_v3  ;;  %v374_v3 = vld [vmem:[%s4017_s1 + $0x140] sm:$0xff]  ;;  %v2076_v8 = vpack.c.bf16 %v361_v1, %v354_v0  ;;  %v388_v16 = vld [vmem:[%s4017_s1 + $0x1b0] sm:$0xff]  ;;  %v294_v19 = vld [vmem:[%s2543_s19 + $0x38] sm:$0xff] }
  0x39   : > { %1959 = vmatpush1.bf16.msra.mxu0 %v1958_v6  ;;  %2131 = vrcp.f32 %v284_v30  ;;  %v292_v6 = vld [vmem:[%s2543_s19 + $0x28] sm:$0xff]  ;;  %v2028_v11 = vpack.c.bf16 %v374_v3, %v367_v2  ;;  %v380_v22 = vld [vmem:[%s4017_s1 + $0x170] sm:$0xff]  ;;  %v382_v26 = vld [vmem:[%s4017_s1 + $0x180] sm:$0xff] }
  0x3a   : > { %1961 = vmatprep.subr.bf16.mxu0 %v1960_v9  ;;  %v366_v9 = vld [vmem:[%s4017_s1 + $0x100] sm:$0xff]  ;;  %v293_v23 = vld [vmem:[%s2543_s19 + $0x30] sm:$0xff]  ;;  %v389_v27 = vld [vmem:[%s4017_s1 + $0x1b8] sm:$0xff] }
  0x3b   : > { %2011 = vmatpush1.bf16.msra.mxu1 %v2010_v12  ;;  %v373_v12 = vld [vmem:[%s4017_s1 + $0x138] sm:$0xff]  ;;  %v395_v28 = vld [vmem:[%s4017_s1 + $0x1e8] sm:$0xff]  ;;  %v2082_v34 = vpack.c.bf16 %v389_v27, %v382_v26  ;;  %v394_v35 = vld [vmem:[%s4017_s1 + $0x1e0] sm:$0xff] }
  0x3c   : > { %2013 = vmatprep.subr.bf16.mxu1 %v2012_v15  ;;  %v381_v15 = vld [vmem:[%s4017_s1 + $0x178] sm:$0xff]  ;;  %v2030_v20 = vpack.c.bf16 %v373_v12, %v366_v9  ;;  %v396_v39 = vld [vmem:[%s4017_s1 + $0x1f0] sm:$0xff]  ;;  %v415_v54 = vld [vmem:[%s4017_s1 + $0x288] sm:$0xff] }
  0x3d   : > { %1963 = vmatpush1.bf16.msra.mxu0 %v1962_v18  ;;  %v298_v46 = vld [vmem:[%s2543_s19 + $0x58] sm:$0xff]  ;;  %v408_v49 = vld [vmem:[%s4017_s1 + $0x250] sm:$0xff]  ;;  %v430_v60 = vld [vmem:[%s4017_s1 + $0x300] sm:$0xff] }
  0x3e   : > { %1965 = vmatprep.subr.bf16.mxu0 %v1964_v21  ;;  %v2079_v21 = vpack.c.bf16 %v375_v14, %v368_v13  ;;  %v297_v50 = vld [vmem:[%s2543_s19 + $0x50] sm:$0xff]  ;;  %v300_v63 = vld [vmem:[%s2543_s19 + $0x68] sm:$0xff]  ;;  %v2042_v0 = vpack.c.bf16 %v415_v54, %v408_v49  ;;  %v422_v2 = vld [vmem:[%s4017_s1 + $0x2c0] sm:$0xff] }
  0x3f   : > { %2015 = vmatpush1.bf16.msra.mxu1 %v2014_v24  ;;  %v2032_v24 = vpack.c.bf16 %v388_v16, %v381_v15  ;;  %v299_v3 = vld [vmem:[%s2543_s19 + $0x60] sm:$0xff]  ;;  %v431_v9 = vld [vmem:[%s4017_s1 + $0x308] sm:$0xff]  ;;  %v302_v14 = vld [vmem:[%s2543_s19 + $0x78] sm:$0xff] }
  0x40   : > { %2017 = vmatprep.subr.bf16.mxu1 %v2016_v25  ;;  %v387_v25 = vld [vmem:[%s4017_s1 + $0x1a8] sm:$0xff]  ;;  %v458_v26 = vld [vmem:[%s4017_s1 + $0x3e0] sm:$0xff]  ;;  %v464_v49 = vld [vmem:[%s4017_s1 + $0x410] sm:$0xff] }
  0x41   : > { %1967 = vmatpush1.bf16.msra.mxu0 %v1966_v29  ;;  %v402_v29 = vld [vmem:[%s4017_s1 + $0x220] sm:$0xff]  ;;  %v2034_v33 = vpack.c.bf16 %v387_v25, %v380_v22  ;;  %v443_v22 = vld [vmem:[%s4017_s1 + $0x368] sm:$0xff] }
  0x42   : > { %603 = vmatprep.subr.mxu0 %v517_v31  ;;  %v451_v25 = vld [vmem:[%s4017_s1 + $0x3a8] sm:$0xff] }
  0x43   : > { %2019 = vmatpush1.bf16.msra.mxu1 %v2018_v32  ;;  %v2132_v47 = vpop.eup %2131  ;;  %v296_v32 = vld [vmem:[%s2543_s19 + $0x48] sm:$0xff] }
  0x44   : > { %722 = vmatprep.subr.mxu1 %v519_v36  ;;  %v2560_v51 = vrot.slane %v2132_v47, %v312_v41  ;;  %v2562_v52 = vrot.slane %v2132_v47, %v308_v42  ;;  %v295_v36 = vld [vmem:[%s2543_s19 + $0x40] sm:$0xff]  ;;  %v409_v41 = vld [vmem:[%s4017_s1 + $0x258] sm:$0xff]  ;;  %v416_v42 = vld [vmem:[%s4017_s1 + $0x290] sm:$0xff] }
  0x45   : > { %604 = vmatpush1.msra.mxu0 %v516_v37  ;;  %v2036_v37 = vpack.c.bf16 %v402_v29, %v395_v28  ;;  %v2040_v53 = vpack.c.bf16 %v416_v42, %v409_v41  ;;  %v304_v29 = vld [vmem:[%s2543_s19 + $0x88] sm:$0xff]  ;;  %v472_v41 = vld [vmem:[%s4017_s1 + $0x450] sm:$0xff] }
  0x46   : > { %2021 = vmatprep.subr.bf16.mxu0 %v2020_v38  ;;  %v2572_v56 = vmul.f32 %v2560_v51, %v288_v44  ;;  %v2575_v57 = vmul.f32 %v2562_v52, %v287_v45  ;;  %v2601_v4 = vmul.f32 %v2560_v51, %v290_v55  ;;  %v2606_v5 = vmul.f32 %v2562_v52, %v289_v61  ;;  %v401_v38 = vld [vmem:[%s4017_s1 + $0x218] sm:$0xff]  ;;  %v410_v55 = vld [vmem:[%s4017_s1 + $0x260] sm:$0xff]  ;;  %v479_v54 = vld [vmem:[%s4017_s1 + $0x488] sm:$0xff] }
  0x47   : > { %723 = vmatpush1.msra.mxu1 %v518_v40  ;;  %v2634_v17 = vmul.f32 %v2560_v51, %v292_v6  ;;  %v2639_v18 = vmul.f32 %v2562_v52, %v291_v10  ;;  %v2667_v30 = vmul.f32 %v2560_v51, %v294_v19  ;;  %v2672_v31 = vmul.f32 %v2562_v52, %v293_v23  ;;  %v403_v40 = vld [vmem:[%s4017_s1 + $0x228] sm:$0xff]  ;;  %v437_v10 = vld [vmem:[%s4017_s1 + $0x338] sm:$0xff]  ;;  %v436_v19 = vld [vmem:[%s4017_s1 + $0x330] sm:$0xff] }
  0x48   : > { %2072 = vmatprep.subr.bf16.mxu1 %v2159_v43  ;;  %1877 = vmatprep.mubr.msk.f32.mxu0 %vm523_vm0, %v2572_v56  ;;  %v2700_v44 = vmul.f32 %v2560_v51, %v296_v32  ;;  %v2705_v45 = vmul.f32 %v2562_v52, %v295_v36  ;;  %v2038_v47 = vpack.c.bf16 %v401_v38, %v394_v35  ;;  %v438_v23 = vld [vmem:[%s4017_s1 + $0x340] sm:$0xff]  ;;  %v452_v38 = vld [vmem:[%s4017_s1 + $0x3b0] sm:$0xff] }
  0x49   : > { %1886 = vmatprep.mubr.msk.f32.mxu1 %vm523_vm0, %v2572_v56  ;;  %616 = vmatmul.mubr.f32.vlgmr.msra.gmra.mrb[0].mxu0 %v2575_v57  ;;  %v2085_v48 = vpack.c.bf16 %v403_v40, %v396_v39  ;;  %v2733_v61 = vmul.f32 %v2560_v51, %v298_v46  ;;  %v2766_v12 = vmul.f32 %v2560_v51, %v300_v63  ;;  %v303_v35 = vld [vmem:[%s2543_s19 + $0x80] sm:$0xff]  ;;  %v459_v39 = vld [vmem:[%s4017_s1 + $0x3e8] sm:$0xff]  ;;  %v465_v40 = vld [vmem:[%s4017_s1 + $0x418] sm:$0xff] }
  0x4a   : > { %735 = vmatmul.mubr.f32.vlgmr.msra.gmra.mrb[0].mxu1 %v2575_v57  ;;  %2023 = vmatpush1.bf16.msra.mxu0 %v2022_v58  ;;  %v417_v58 = vld [vmem:[%s4017_s1 + $0x298] sm:$0xff]  ;;  %v2771_v13 = vmul.f32 %v2562_v52, %v299_v3  ;;  %v2799_v27 = vmul.f32 %v2560_v51, %v302_v14  ;;  %v2050_v32 = vpack.c.bf16 %v443_v22, %v436_v19 }
  0x4b   : > { %2074 = vmatpush1.bf16.msra.mxu1 %v2073_v59  ;;  %2025 = vmatprep.subr.bf16.mxu0 %v2024_v62  ;;  %v423_v59 = vld [vmem:[%s4017_s1 + $0x2c8] sm:$0xff]  ;;  %v2738_v62 = vmul.f32 %v2562_v52, %v297_v50  ;;  %v2088_v1 = vpack.c.bf16 %v417_v58, %v410_v55  ;;  %v2052_v36 = vpack.c.bf16 %v458_v26, %v451_v25  ;;  %v486_v55 = vld [vmem:[%s4017_s1 + $0x4c0] sm:$0xff]  ;;  %v493_v3 = vld [vmem:[%s4017_s1 + $0x4f8] sm:$0xff] }
  0x4c   : > { %2075 = vmatprep.subr.bf16.mxu1 %v2159_v43  ;;  %1878 = vmatprep.mubr.msk.f32.mxu0 %vm523_vm0, %v2601_v4  ;;  %v2044_v6 = vpack.c.bf16 %v430_v60, %v423_v59  ;;  %v2832_v42 = vmul.f32 %v2560_v51, %v304_v29  ;;  %v2837_v46 = vmul.f32 %v2562_v52, %v303_v35  ;;  %v471_v50 = vld [vmem:[%s4017_s1 + $0x448] sm:$0xff]  ;;  %v478_v60 = vld [vmem:[%s4017_s1 + $0x480] sm:$0xff]  ;;  %v501_v14 = vld [vmem:[%s4017_s1 + $0x538] sm:$0xff] }
  0x4d   : > { %1887 = vmatprep.mubr.msk.f32.mxu1 %vm523_vm0, %v2601_v4  ;;  %622 = vmatmul.mubr.f32.gmra.mrb[2].mxu0 %v2606_v5  ;;  %v2056_v51 = vpack.c.bf16 %v472_v41, %v465_v40  ;;  %v2058_v58 = vpack.c.bf16 %v471_v50, %v464_v49  ;;  %v2060_v63 = vpack.c.bf16 %v486_v55, %v479_v54  ;;  %v515_v25 = vld [vmem:[%s4017_s1 + $0x5a8] sm:$0xff]  ;;  %v522_v35 = vld [vmem:[%s4017_s1 + $0x5e0] sm:$0xff] }
  0x4e   : > { %741 = vmatmul.mubr.f32.gmra.mrb[2].mxu1 %v2606_v5  ;;  %2027 = vmatpush1.bf16.msra.mxu0 %v2026_v7  ;;  %v429_v7 = vld [vmem:[%s4017_s1 + $0x2f8] sm:$0xff] }
  0x4f   : > { %2077 = vmatpush1.bf16.msra.mxu1 %v2076_v8  ;;  %2029 = vmatprep.subr.bf16.mxu0 %v2028_v11  ;;  %v424_v8 = vld [vmem:[%s4017_s1 + $0x2d0] sm:$0xff]  ;;  %v2046_v15 = vpack.c.bf16 %v429_v7, %v422_v2  ;;  %v487_v2 = vld [vmem:[%s4017_s1 + $0x4c8] sm:$0xff] }
  0x50   : > { %2078 = vmatprep.subr.bf16.mxu1 %v2159_v43  ;;  %1879 = vmatprep.mubr.msk.f32.mxu0 %vm523_vm0, %v2634_v17  ;;  %v444_v11 = vld [vmem:[%s4017_s1 + $0x370] sm:$0xff]  ;;  %v2091_v16 = vpack.c.bf16 %v431_v9, %v424_v8 }
  0x51   : > { %1888 = vmatprep.mubr.msk.f32.mxu1 %vm523_vm0, %v2634_v17  ;;  %628 = vmatmul.mubr.f32.gmra.mrb[4].mxu0 %v2639_v18  ;;  %v492_v9 = vld [vmem:[%s4017_s1 + $0x4f0] sm:$0xff] }
  0x52   : > { %747 = vmatmul.mubr.f32.gmra.mrb[4].mxu1 %v2639_v18  ;;  %2031 = vmatpush1.bf16.msra.mxu0 %v2030_v20  ;;  %v301_v20 = vld [vmem:[%s2543_s19 + $0x70] sm:$0xff] }
  0x53   : > { %2080 = vmatpush1.bf16.msra.mxu1 %v2079_v21  ;;  %2033 = vmatprep.subr.bf16.mxu0 %v2032_v24  ;;  %v2048_v21 = vpack.c.bf16 %v444_v11, %v437_v10  ;;  %v445_v24 = vld [vmem:[%s4017_s1 + $0x378] sm:$0xff]  ;;  %v2804_v28 = vmul.f32 %v2562_v52, %v301_v20  ;;  %v466_v52 = vld [vmem:[%s4017_s1 + $0x420] sm:$0xff]  ;;  %v499_v11 = vld [vmem:[%s4017_s1 + $0x528] sm:$0xff] }
  0x54   : > { %2081 = vmatprep.subr.bf16.mxu1 %v2159_v43  ;;  %1880 = vmatprep.mubr.msk.f32.mxu0 %vm523_vm0, %v2667_v30  ;;  %v2066_v19 = vpack.c.bf16 %v499_v11, %v492_v9 }
  0x55   : > { %1889 = vmatprep.mubr.msk.f32.mxu1 %vm523_vm0, %v2667_v30  ;;  %634 = vmatmul.mubr.f32.gmra.mrb[6].mxu0 %v2672_v31 }
  0x56   : > { %753 = vmatmul.mubr.f32.gmra.mrb[6].mxu1 %v2672_v31  ;;  %2035 = vmatpush1.bf16.msra.mxu0 %v2034_v33  ;;  %v2094_v33 = vpack.c.bf16 %v445_v24, %v438_v23  ;;  %v513_v23 = vld [vmem:[%s4017_s1 + $0x598] sm:$0xff]  ;;  %v508_v24 = vld [vmem:[%s4017_s1 + $0x570] sm:$0xff] }
  0x57   : > { %2083 = vmatpush1.bf16.msra.mxu1 %v2082_v34  ;;  %2037 = vmatprep.subr.bf16.mxu0 %v2036_v37  ;;  %v450_v34 = vld [vmem:[%s4017_s1 + $0x3a0] sm:$0xff]  ;;  %v457_v37 = vld [vmem:[%s4017_s1 + $0x3d8] sm:$0xff]  ;;  %v2109_v29 = vpack.c.bf16 %v515_v25, %v508_v24 }
  0x58   : > { %2084 = vmatprep.subr.bf16.mxu1 %v2159_v43  ;;  %1881 = vmatprep.mubr.msk.f32.mxu0 %vm523_vm0, %v2700_v44 }
  0x59   : > { %1890 = vmatprep.mubr.msk.f32.mxu1 %vm523_vm0, %v2700_v44  ;;  %640 = vmatmul.mubr.f32.gmra.mrb[8].mxu0 %v2705_v45 }
  0x5a   : > { %759 = vmatmul.mubr.f32.gmra.mrb[8].mxu1 %v2705_v45  ;;  %2039 = vmatpush1.bf16.msra.mxu0 %v2038_v47  ;;  %v2054_v47 = vpack.c.bf16 %v457_v37, %v450_v34  ;;  %v2160_v34 = vmov 0.0  }
  0x5b   : > { %2086 = vmatpush1.bf16.msra.mxu1 %v2085_v48  ;;  %2041 = vmatprep.subr.bf16.mxu0 %v2040_v53  ;;  %v2097_v48 = vpack.c.bf16 %v459_v39, %v452_v38  ;;  %v473_v53 = vld [vmem:[%s4017_s1 + $0x458] sm:$0xff] }
  0x5c   : > { %2087 = vmatprep.subr.bf16.mxu1 %v2159_v43  ;;  %1882 = vmatprep.mubr.msk.f32.mxu0 %vm523_vm0, %v2733_v61  ;;  %v2100_v59 = vpack.c.bf16 %v473_v53, %v466_v52 }
  0x5d   : > { %1891 = vmatprep.mubr.msk.f32.mxu1 %vm523_vm0, %v2733_v61  ;;  %646 = vmatmul.mubr.f32.gmra.mrb[10].mxu0 %v2738_v62 }
  0x5e   : > { %765 = vmatmul.mubr.f32.gmra.mrb[10].mxu1 %v2738_v62  ;;  %2043 = vmatpush1.bf16.msra.mxu0 %v2042_v0  ;;  %v485_v0 = vld [vmem:[%s4017_s1 + $0x4b8] sm:$0xff] }
  0x5f   : > { %2089 = vmatpush1.bf16.msra.mxu1 %v2088_v1  ;;  %2045 = vmatprep.subr.bf16.mxu0 %v2044_v6  ;;  %v480_v1 = vld [vmem:[%s4017_s1 + $0x490] sm:$0xff]  ;;  %v2062_v7 = vpack.c.bf16 %v485_v0, %v478_v60 }
  0x60   : > { %2090 = vmatprep.subr.bf16.mxu1 %v2159_v43  ;;  %1883 = vmatprep.mubr.msk.f32.mxu0 %vm523_vm0, %v2766_v12  ;;  %v500_v6 = vld [vmem:[%s4017_s1 + $0x530] sm:$0xff]  ;;  %v2103_v8 = vpack.c.bf16 %v487_v2, %v480_v1 }
  0x61   : > { %1892 = vmatprep.mubr.msk.f32.mxu1 %vm523_vm0, %v2766_v12  ;;  %652 = vmatmul.mubr.f32.gmra.mrb[12].mxu0 %v2771_v13  ;;  %v2064_v10 = vpack.c.bf16 %v500_v6, %v493_v3 }
  0x62   : > { %771 = vmatmul.mubr.f32.gmra.mrb[12].mxu1 %v2771_v13  ;;  %2047 = vmatpush1.bf16.msra.mxu0 %v2046_v15  ;;  %v507_v15 = vld [vmem:[%s4017_s1 + $0x568] sm:$0xff] }
  0x63   : > { %2092 = vmatpush1.bf16.msra.mxu1 %v2091_v16  ;;  %2049 = vmatprep.subr.bf16.mxu0 %v2048_v21  ;;  %v514_v16 = vld [vmem:[%s4017_s1 + $0x5a0] sm:$0xff] }
  0x64   : > { %2093 = vmatprep.subr.bf16.mxu1 %v2159_v43  ;;  %1884 = vmatprep.mubr.msk.f32.mxu0 %vm523_vm0, %v2799_v27  ;;  %v506_v21 = vld [vmem:[%s4017_s1 + $0x560] sm:$0xff]  ;;  %v2068_v22 = vpack.c.bf16 %v514_v16, %v507_v15 }
  0x65   : > { %1893 = vmatprep.mubr.msk.f32.mxu1 %vm523_vm0, %v2799_v27  ;;  %658 = vmatmul.mubr.f32.gmra.mrb[14].mxu0 %v2804_v28  ;;  %v2070_v26 = vpack.c.bf16 %v513_v23, %v506_v21 }
  0x66   : > { %777 = vmatmul.mubr.f32.gmra.mrb[14].mxu1 %v2804_v28  ;;  %2051 = vmatpush1.bf16.msra.mxu0 %v2050_v32  ;;  %v521_v32 = vld [vmem:[%s4017_s1 + $0x5d8] sm:$0xff] }
  0x67   : > { %2095 = vmatpush1.bf16.msra.mxu1 %v2094_v33  ;;  %2053 = vmatprep.subr.bf16.mxu0 %v2052_v36  ;;  %v520_v33 = vld [vmem:[%s4017_s1 + $0x5d0] sm:$0xff] }
  0x68   : > { %2096 = vmatprep.subr.bf16.mxu1 %v2159_v43  ;;  %1885 = vmatprep.mubr.msk.f32.mxu0 %vm523_vm0, %v2832_v42 }
  0x69   : > { %1894 = vmatprep.mubr.msk.f32.mxu1 %vm523_vm0, %v2832_v42  ;;  %664 = vmatmul.mubr.f32.gmra.mrb[16].mxu0 %v2837_v46 }
  0x6a   : > { %783 = vmatmul.mubr.f32.gmra.mrb[16].mxu1 %v2837_v46  ;;  %2055 = vmatpush1.bf16.msra.mxu0 %v2054_v47 }
  0x6b   : > { %2098 = vmatpush1.bf16.msra.mxu1 %v2097_v48  ;;  %2057 = vmatprep.subr.bf16.mxu0 %v2056_v51 }
  0x6c   : > { %2099 = vmatprep.subr.bf16.mxu1 %v2159_v43  ;;  %1895 = vmatprep.mubr.msk.f32.mxu0 %vm523_vm0, %v2572_v56 }
  0x6d   : > { %1904 = vmatprep.mubr.msk.f32.mxu1 %vm523_vm0, %v2572_v56  ;;  %v494_v56 = vld [vmem:[%s4017_s1 + $0x500] sm:$0xff] }
  0x6e   : > { %2059 = vmatpush1.bf16.msra.mxu0 %v2058_v58  ;;  %v2106_v20 = vpack.c.bf16 %v501_v14, %v494_v56 }
  0x6f   : > { %2101 = vmatpush1.bf16.msra.mxu1 %v2100_v59  ;;  %2061 = vmatprep.subr.bf16.mxu0 %v2060_v63 }
  0x70   : > { %2102 = vmatprep.subr.bf16.mxu1 %v2159_v43 }
  0x72   : > { %2063 = vmatpush1.bf16.msra.mxu0 %v2062_v7 }
  0x73   : > { %2104 = vmatpush1.bf16.msra.mxu1 %v2103_v8  ;;  %2065 = vmatprep.subr.bf16.mxu0 %v2064_v10 }
  0x74   : > { %2105 = vmatprep.subr.bf16.mxu1 %v2159_v43 }
  0x76   : > { %2067 = vmatpush1.bf16.msra.mxu0 %v2066_v19 }
  0x77   : > { %2107 = vmatpush1.bf16.msra.mxu1 %v2106_v20  ;;  %2069 = vmatprep.subr.bf16.mxu0 %v2068_v22 }
  0x78   : > { %2108 = vmatprep.subr.bf16.mxu1 %v2159_v43 }
  0x7a   : > { %2071 = vmatpush1.bf16.msra.mxu0 %v2070_v26 }
  0x7b   : > { %2110 = vmatpush1.bf16.msra.mxu1 %v2109_v29  ;;  %841 = vmatprep.subr.mxu0 %v521_v32 }
  0x7c   : > { %960 = vmatprep.subr.mxu1 %v2160_v34 }
  0x7e   : > { %842 = vmatpush1.msra.mxu0 %v520_v33 }
  0x7f   : > { %961 = vmatpush1.msra.mxu1 %v522_v35  ;;  %854 = vmatmul.mubr.f32.vlgmr.msra.gmra.mrb[18].mxu0 %v2575_v57 }
  0x80   : > { %973 = vmatmul.mubr.f32.vlgmr.msra.gmra.mrb[18].mxu1 %v2575_v57  ;;  %1896 = vmatprep.mubr.msk.f32.mxu0 %vm523_vm0, %v2601_v4 }
  0x81   : > { %1905 = vmatprep.mubr.msk.f32.mxu1 %vm523_vm0, %v2601_v4 }
  0x83   : > { %860 = vmatmul.mubr.f32.gmra.mrb[20].mxu0 %v2606_v5 }
  0x84   : > { %978 = vmatmul.mubr.f32.gmra.mrb[20].mxu1 %v2606_v5  ;;  %1897 = vmatprep.mubr.msk.f32.mxu0 %vm523_vm0, %v2634_v17 }
  0x85   : > { %1906 = vmatprep.mubr.msk.f32.mxu1 %vm523_vm0, %v2634_v17 }
  0x87   : > { %866 = vmatmul.mubr.f32.gmra.mrb[22].mxu0 %v2639_v18 }
  0x88   : > { %983 = vmatmul.mubr.f32.gmra.mrb[22].mxu1 %v2639_v18  ;;  %1898 = vmatprep.mubr.msk.f32.mxu0 %vm523_vm0, %v2667_v30 }
  0x89   : > { %1907 = vmatprep.mubr.msk.f32.mxu1 %vm523_vm0, %v2667_v30 }
  0x8b   : > { %872 = vmatmul.mubr.f32.gmra.mrb[24].mxu0 %v2672_v31 }
  0x8c   : > { %988 = vmatmul.mubr.f32.gmra.mrb[24].mxu1 %v2672_v31  ;;  %1899 = vmatprep.mubr.msk.f32.mxu0 %vm523_vm0, %v2700_v44 }
  0x8d   : > { %1908 = vmatprep.mubr.msk.f32.mxu1 %vm523_vm0, %v2700_v44 }
  0x8f   : > { %878 = vmatmul.mubr.f32.gmra.mrb[26].mxu0 %v2705_v45 }
  0x90   : > { %993 = vmatmul.mubr.f32.gmra.mrb[26].mxu1 %v2705_v45  ;;  %1900 = vmatprep.mubr.msk.f32.mxu0 %vm523_vm0, %v2733_v61 }
  0x91   : > { %1909 = vmatprep.mubr.msk.f32.mxu1 %vm523_vm0, %v2733_v61 }
  0x93   : > { %884 = vmatmul.mubr.f32.gmra.mrb[28].mxu0 %v2738_v62 }
  0x94   : > { %998 = vmatmul.mubr.f32.gmra.mrb[28].mxu1 %v2738_v62  ;;  %1901 = vmatprep.mubr.msk.f32.mxu0 %vm523_vm0, %v2766_v12 }
  0x95   : > { %1910 = vmatprep.mubr.msk.f32.mxu1 %vm523_vm0, %v2766_v12 }
  0x97   : > { %890 = vmatmul.mubr.f32.gmra.mrb[30].mxu0 %v2771_v13 }
  0x98   : > { %1003 = vmatmul.mubr.f32.gmra.mrb[30].mxu1 %v2771_v13  ;;  %1902 = vmatprep.mubr.msk.f32.mxu0 %vm523_vm0, %v2799_v27 }
  0x99   : > { %1911 = vmatprep.mubr.msk.f32.mxu1 %vm523_vm0, %v2799_v27 }
  0x9b   : > { %896 = vmatmul.mubr.f32.gmra.mrb[32].mxu0 %v2804_v28 }
  0x9c   : > { %1008 = vmatmul.mubr.f32.gmra.mrb[32].mxu1 %v2804_v28  ;;  %1903 = vmatprep.mubr.msk.f32.mxu0 %vm523_vm0, %v2832_v42 }
  0x9d   : > { %1912 = vmatprep.mubr.msk.f32.mxu1 %vm523_vm0, %v2832_v42 }
  0x9f   : > { %902 = vmatmul.mubr.f32.gmra.mrb[34].mxu0 %v2837_v46 }
  0xa0   : > { %1013 = vmatmul.mubr.f32.gmra.mrb[34].mxu1 %v2837_v46 }
 0x11c   : > { %v2979_v43 = vpop.f32.mrb[0].mxu0 }
 0x11d   : > { %v2981_v57 = vpop.f32.mrb[0].mxu1  ;;  %v1109_v4 = vmul.f32 %v2979_v43, %v2979_v43  ;;  %v2985_v5 = vpop.f32.mrb[1].mxu0 }
 0x11e   : > { %v2987_v17 = vpop.f32.mrb[1].mxu1  ;;  %v1018_v18 = vadd.f32 %v2985_v5, %v2979_v43  ;;  %v1110_v30 = vmul.f32 %v2985_v5, %v2985_v5  ;;  %v1111_v31 = vmul.f32 %v2981_v57, %v2981_v57 }
 0x11f   : > { %v1112_v61 = vmul.f32 %v2987_v17, %v2987_v17 }
 0x120   : > { %v1172_v44 = vadd.f32 %v1110_v30, %v1109_v4  ;;  %v1019_v45 = vadd.f32 %v1018_v18, %v2981_v57  ;;  %v2998_v62 = vpop.f32.mrb[2].mxu0 }
 0x121   : > { %v3000_v12 = vpop.f32.mrb[2].mxu1  ;;  %v1116_v13 = vmul.f32 %v2998_v62, %v2998_v62  ;;  %v3004_v27 = vpop.f32.mrb[3].mxu0 }
 0x122   : > { %v1118_v28 = vmul.f32 %v3000_v12, %v3000_v12  ;;  %v3008_v36 = vpop.f32.mrb[3].mxu1  ;;  %v1173_v37 = vadd.f32 %v1172_v44, %v1111_v31  ;;  %v3011_v38 = vadd.f32 %v1019_v45, %v2987_v17  ;;  %v1028_v39 = vadd.f32 %v3004_v27, %v2998_v62 }
 0x123   : > { %v1117_v40 = vmul.f32 %v3004_v27, %v3004_v27  ;;  %v1119_v48 = vmul.f32 %v3008_v36, %v3008_v36 }
 0x124   : > { %v3017_v41 = vadd.f32 %v1173_v37, %v1112_v61  ;;  %v1029_v46 = vadd.f32 %v1028_v39, %v3000_v12  ;;  %v3020_v47 = vpop.f32.mrb[4].mxu0 }
 0x125   : > { %v1181_v42 = vadd.f32 %v1117_v40, %v1116_v13  ;;  %v3024_v49 = vpop.f32.mrb[4].mxu1  ;;  %v1123_v51 = vmul.f32 %v3020_v47, %v3020_v47  ;;  %v3028_v50 = vpop.f32.mrb[5].mxu0 }
 0x126   : > { %v1125_v52 = vmul.f32 %v3024_v49, %v3024_v49  ;;  %v3032_v53 = vpop.f32.mrb[5].mxu1  ;;  %v1037_v55 = vadd.f32 %v3028_v50, %v3020_v47  ;;  %v1124_v58 = vmul.f32 %v3028_v50, %v3028_v50  ;;  %v3039_v59 = vadd.f32 %v1029_v46, %v3008_v36 }
 0x127   : > { %v1182_v54 = vadd.f32 %v1181_v42, %v1118_v28  ;;  %v1126_v2 = vmul.f32 %v3032_v53, %v3032_v53 }
 0x128   : > { %v1190_v60 = vadd.f32 %v1124_v58, %v1123_v51  ;;  %v1038_v0 = vadd.f32 %v1037_v55, %v3024_v49  ;;  %v3044_v1 = vpop.f32.mrb[6].mxu0 }
 0x129   : > { %v3041_v63 = vadd.f32 %v1182_v54, %v1119_v48  ;;  %v3048_v3 = vpop.f32.mrb[6].mxu1  ;;  %v1130_v6 = vmul.f32 %v3044_v1, %v3044_v1  ;;  %v3052_v7 = vpop.f32.mrb[7].mxu0 }
 0x12a   : > { %4053 = vst [vmem:[#allocation2_spill] sm:$0xff] %v3048_v3  ;;  %4054 = vst [vmem:[#allocation3_spill] sm:$0xff] %v3052_v7  ;;  %v1132_v8 = vmul.f32 %v3048_v3, %v3048_v3  ;;  %v3056_v9 = vpop.f32.mrb[7].mxu1  ;;  %v1191_v10 = vadd.f32 %v1190_v60, %v1125_v52  ;;  %v1046_v11 = vadd.f32 %v3052_v7, %v3044_v1 }
 0x12b   : > { %4055 = vst [vmem:[#allocation4_spill] sm:$0xff] %v3056_v9  ;;  %v1131_v56 = vmul.f32 %v3052_v7, %v3052_v7  ;;  %v3063_v14 = vadd.f32 %v1038_v0, %v3032_v53  ;;  %v1133_v21 = vmul.f32 %v3056_v9, %v3056_v9 }
 0x12c   : > { %v3065_v16 = vadd.f32 %v1191_v10, %v1126_v2  ;;  %v1047_v19 = vadd.f32 %v1046_v11, %v3048_v3  ;;  %v3068_v20 = vpop.f32.mrb[8].mxu0 }
 0x12d   : > { %v1199_v15 = vadd.f32 %v1131_v56, %v1130_v6  ;;  %v3072_v22 = vpop.f32.mrb[8].mxu1  ;;  %v1137_v23 = vmul.f32 %v3068_v20, %v3068_v20  ;;  %v3076_v24 = vpop.f32.mrb[9].mxu0 }
 0x12e   : > { %v1139_v25 = vmul.f32 %v3072_v22, %v3072_v22  ;;  %v3080_v26 = vpop.f32.mrb[9].mxu1  ;;  %v1055_v32 = vadd.f32 %v3076_v24, %v3068_v20  ;;  %v1138_v33 = vmul.f32 %v3076_v24, %v3076_v24  ;;  %v3087_v34 = vadd.f32 %v1047_v19, %v3056_v9 }
 0x12f   : > { %v1200_v29 = vadd.f32 %v1199_v15, %v1132_v8  ;;  %v1140_v31 = vmul.f32 %v3080_v26, %v3080_v26 }
 0x130   : > { %v1208_v35 = vadd.f32 %v1138_v33, %v1137_v23  ;;  %v1056_v18 = vadd.f32 %v1055_v32, %v3072_v22  ;;  %v3092_v30 = vpop.f32.mrb[10].mxu0 }
 0x131   : > { %v3089_v4 = vadd.f32 %v1200_v29, %v1133_v21  ;;  %4056 = vst [vmem:[#allocation5_spill] sm:$0xff] %v3092_v30  ;;  %v3096_v44 = vpop.f32.mrb[10].mxu1  ;;  %v1144_v45 = vmul.f32 %v3092_v30, %v3092_v30  ;;  %v3100_v61 = vpop.f32.mrb[11].mxu0 }
 0x132   : > { %4057 = vst [vmem:[#allocation6_spill] sm:$0xff] %v3096_v44  ;;  %4058 = vst [vmem:[#allocation7_spill] sm:$0xff] %v3100_v61  ;;  %v1146_v13 = vmul.f32 %v3096_v44, %v3096_v44  ;;  %v3104_v28 = vpop.f32.mrb[11].mxu1  ;;  %v1209_v37 = vadd.f32 %v1208_v35, %v1139_v25  ;;  %v1064_v39 = vadd.f32 %v3100_v61, %v3092_v30 }
 0x133   : > { %4059 = vst [vmem:[#allocation8_spill] sm:$0xff] %v3104_v28  ;;  %v1145_v40 = vmul.f32 %v3100_v61, %v3100_v61  ;;  %v3111_v42 = vadd.f32 %v1056_v18, %v3080_v26  ;;  %v1147_v54 = vmul.f32 %v3104_v28, %v3104_v28 }
 0x134   : > { %v3113_v48 = vadd.f32 %v1209_v37, %v1140_v31  ;;  %v1065_v51 = vadd.f32 %v1064_v39, %v3096_v44  ;;  %v3116_v52 = vpop.f32.mrb[12].mxu0 }
 0x135   : > { %v1217_v46 = vadd.f32 %v1145_v40, %v1144_v45  ;;  %v3120_v55 = vpop.f32.mrb[12].mxu1  ;;  %v1151_v58 = vmul.f32 %v3116_v52, %v3116_v52  ;;  %v3124_v60 = vpop.f32.mrb[13].mxu0 }
 0x136   : > { %v1153_v0 = vmul.f32 %v3120_v55, %v3120_v55  ;;  %v3128_v2 = vpop.f32.mrb[13].mxu1  ;;  %v1073_v8 = vadd.f32 %v3124_v60, %v3116_v52  ;;  %v1152_v10 = vmul.f32 %v3124_v60, %v3124_v60  ;;  %v3135_v11 = vadd.f32 %v1065_v51, %v3104_v28 }
 0x137   : > { %v1218_v6 = vadd.f32 %v1217_v46, %v1146_v13  ;;  %v1154_v23 = vmul.f32 %v3128_v2, %v3128_v2 }
 0x138   : > { %v1226_v56 = vadd.f32 %v1152_v10, %v1151_v58  ;;  %v1074_v19 = vadd.f32 %v1073_v8, %v3120_v55  ;;  %v3140_v21 = vpop.f32.mrb[14].mxu0 }
 0x139   : > { %v3137_v15 = vadd.f32 %v1218_v6, %v1147_v54  ;;  %4060 = vst [vmem:[#allocation9_spill] sm:$0xff] %v3140_v21  ;;  %v3144_v25 = vpop.f32.mrb[14].mxu1  ;;  %v1158_v29 = vmul.f32 %v3140_v21, %v3140_v21  ;;  %v3148_v32 = vpop.f32.mrb[15].mxu0 }
 0x13a   : > { %4061 = vst [vmem:[#allocation10_spill] sm:$0xff] %v3144_v25  ;;  %4062 = vst [vmem:[#allocation11_spill] sm:$0xff] %v3148_v32  ;;  %v1160_v33 = vmul.f32 %v3144_v25, %v3144_v25  ;;  %v3152_v35 = vpop.f32.mrb[15].mxu1  ;;  %v1227_v18 = vadd.f32 %v1226_v56, %v1153_v0  ;;  %v1082_v31 = vadd.f32 %v3148_v32, %v3140_v21 }
 0x13b   : > { %4063 = vst [vmem:[#allocation12_spill] sm:$0xff] %v3152_v35  ;;  %v1159_v45 = vmul.f32 %v3148_v32, %v3148_v32  ;;  %v3159_v13 = vadd.f32 %v1074_v19, %v3128_v2  ;;  %v1161_v51 = vmul.f32 %v3152_v35, %v3152_v35 }
 0x13c   : > { %v3161_v39 = vadd.f32 %v1227_v18, %v1154_v23  ;;  %v1083_v40 = vadd.f32 %v1082_v31, %v3144_v25  ;;  %v3164_v46 = vpop.f32.mrb[16].mxu0 }
 0x13d   : > { %v1235_v37 = vadd.f32 %v1159_v45, %v1158_v29  ;;  %4064 = vst [vmem:[#allocation13_spill] sm:$0xff] %v3164_v46  ;;  %v3168_v54 = vpop.f32.mrb[16].mxu1  ;;  %v1165_v58 = vmul.f32 %v3164_v46, %v3164_v46  ;;  %v3172_v0 = vpop.f32.mrb[17].mxu0 }
 0x13e   : > { %4065 = vst [vmem:[#allocation14_spill] sm:$0xff] %v3168_v54  ;;  %4066 = vst [vmem:[#allocation15_spill] sm:$0xff] %v3172_v0  ;;  %v1167_v6 = vmul.f32 %v3168_v54, %v3168_v54  ;;  %v3176_v8 = vpop.f32.mrb[17].mxu1  ;;  %v1091_v56 = vadd.f32 %v3172_v0, %v3164_v46  ;;  %v1166_v19 = vmul.f32 %v3172_v0, %v3172_v0 }
 0x13f   : > { %4067 = vst [vmem:[#allocation16_spill] sm:$0xff] %v3176_v8  ;;  %v1236_v10 = vadd.f32 %v1235_v37, %v1160_v33  ;;  %v3183_v23 = vadd.f32 %v1083_v40, %v3152_v35  ;;  %v1168_v45 = vmul.f32 %v3176_v8, %v3176_v8 }
 0x140   : > { %v1244_v29 = vadd.f32 %v1166_v19, %v1165_v58  ;;  %v1092_v31 = vadd.f32 %v1091_v56, %v3168_v54 }
 0x141   : > { %v3185_v18 = vadd.f32 %v1236_v10, %v1161_v51 }
 0x142   : > { %v1245_v25 = vadd.f32 %v1244_v29, %v1167_v6  ;;  %v3191_v33 = vadd.f32 %v1092_v31, %v3176_v8 }
 0x144   : > { %v3193_v37 = vadd.f32 %v1245_v25, %v1168_v45 }
 0x152   : > { %v3195_v46 = vpop.f32.mrb[18].mxu0 }
 0x153   : > { %v3197_v0 = vpop.f32.mrb[18].mxu1  ;;  %v1021_v40 = vadd.f32 %v3011_v38, %v3195_v46  ;;  %v1113_v51 = vmul.f32 %v3195_v46, %v3195_v46  ;;  %v3203_v58 = vpop.f32.mrb[19].mxu0 }
 0x154   : > { %v976_v10 = vpop.f32.mrb[19].mxu1  ;;  %v1115_v6 = vmul.f32 %v3197_v0, %v3197_v0  ;;  %v1114_v25 = vmul.f32 %v3203_v58, %v3203_v58  ;;  %v1024_v56 = vsel %vm1023_vm1, %v3197_v0, 0.0 }
 0x155   : > { %v1022_v19 = vadd.f32 %v1021_v40, %v3203_v58  ;;  %v1175_v29 = vadd.f32 %v3017_v41, %v1113_v51 }
 0x156   : > { %v3213_v38 = vpop.f32.mrb[20].mxu0  ;;  %v1177_v45 = vsel %vm1023_vm1, %v1115_v6, 0.0 }
 0x157   : > { %v3215_v31 = vpop.f32.mrb[20].mxu1  ;;  %v1031_v10 = vadd.f32 %v3039_v59, %v3213_v38  ;;  %v1120_v8 = vmul.f32 %v3213_v38, %v3213_v38  ;;  %v3222_v54 = vpop.f32.mrb[21].mxu0  ;;  %v1025_v40 = vadd.f32 %v1024_v56, %v1022_v19  ;;  %v1176_v51 = vadd.f32 %v1175_v29, %v1114_v25 }
 0x158   : > { %v1122_v35 = vmul.f32 %v3215_v31, %v3215_v31  ;;  %v981_v32 = vpop.f32.mrb[21].mxu1  ;;  %v1121_v41 = vmul.f32 %v3222_v54, %v3222_v54  ;;  %v1033_v6 = vsel %vm1023_vm1, %v3215_v31, 0.0 }
 0x159   : > { %1026 = vadd.xlane.f32.xlu0 %v1025_v40  ;;  %v1032_v59 = vadd.f32 %v1031_v10, %v3222_v54  ;;  %v1184_v21 = vadd.f32 %v3041_v63, %v1120_v8  ;;  %v1178_v44 = vadd.f32 %v1177_v45, %v1176_v51 }
 0x15a   : > { %v3232_v28 = vpop.f32.mrb[22].mxu0  ;;  %v1186_v56 = vsel %vm1023_vm1, %v1122_v35, 0.0 }
 0x15b   : > { %v3234_v61 = vpop.f32.mrb[22].mxu1  ;;  %v1040_v32 = vadd.f32 %v3063_v14, %v3232_v28  ;;  %v1127_v25 = vmul.f32 %v3232_v28, %v3232_v28  ;;  %v3241_v19 = vpop.f32.mrb[23].mxu0  ;;  %v1034_v10 = vadd.f32 %v1033_v6, %v1032_v59  ;;  %1179 = vadd.xlane.f32.xlu1 %v1178_v44  ;;  %v1185_v45 = vadd.f32 %v1184_v21, %v1121_v41 }
 0x15c   : > { %v1129_v29 = vmul.f32 %v3234_v61, %v3234_v61  ;;  %v986_v63 = vpop.f32.mrb[23].mxu1  ;;  %v1128_v8 = vmul.f32 %v3241_v19, %v3241_v19  ;;  %v1042_v35 = vsel %vm1023_vm1, %v3234_v61, 0.0 }
 0x15d   : > { %1035 = vadd.xlane.f32.xlu0 %v1034_v10  ;;  %v1041_v14 = vadd.f32 %v1040_v32, %v3241_v19  ;;  %v1193_v40 = vadd.f32 %v3065_v16, %v1127_v25  ;;  %v1187_v9 = vadd.f32 %v1186_v56, %v1185_v45 }
 0x15e   : > { %v3251_v51 = vpop.f32.mrb[24].mxu0  ;;  %v1195_v6 = vsel %vm1023_vm1, %v1129_v29, 0.0 }
 0x15f   : > { %4068 = vst [vmem:[#allocation17_spill] sm:$0xff] %v3251_v51  ;;  %v3253_v30 = vpop.f32.mrb[24].mxu1  ;;  %v1049_v44 = vadd.f32 %v3087_v34, %v3251_v51  ;;  %v1134_v21 = vmul.f32 %v3251_v51, %v3251_v51  ;;  %v3260_v41 = vpop.f32.mrb[25].mxu0  ;;  %v1043_v32 = vadd.f32 %v1042_v35, %v1041_v14  ;;  %v1194_v10 = vadd.f32 %v1193_v40, %v1128_v8 }
 0x160   : > { %4069 = vst [vmem:[#allocation18_spill] sm:$0xff] %v3253_v30  ;;  %4070 = vst [vmem:[#allocation19_spill] sm:$0xff] %v3260_v41  ;;  %v1136_v59 = vmul.f32 %v3253_v30, %v3253_v30  ;;  %v991_v16 = vpop.f32.mrb[25].mxu1  ;;  %v1135_v25 = vmul.f32 %v3260_v41, %v3260_v41  ;;  %v1051_v29 = vsel %vm1023_vm1, %v3253_v30, 0.0 }
 0x161   : > { %1188 = vadd.xlane.f32.xlu0 %v1187_v9  ;;  %1044 = vadd.xlane.f32.xlu1 %v1043_v32  ;;  %v1202_v56 = vadd.f32 %v3089_v4, %v1134_v21  ;;  %v1050_v34 = vadd.f32 %v1049_v44, %v3260_v41  ;;  %v1196_v51 = vadd.f32 %v1195_v6, %v1194_v10 }
 0x162   : > { %v3270_v63 = vpop.f32.mrb[26].mxu0  ;;  %v1204_v35 = vsel %vm1023_vm1, %v1136_v59, 0.0 }
 0x163   : > { %v3272_v45 = vpop.f32.mrb[26].mxu1  ;;  %v1058_v14 = vadd.f32 %v3111_v42, %v3270_v63  ;;  %v1141_v9 = vmul.f32 %v3270_v63, %v3270_v63  ;;  %v3279_v8 = vpop.f32.mrb[27].mxu0  ;;  %v1203_v44 = vadd.f32 %v1202_v56, %v1135_v25  ;;  %v1052_v32 = vadd.f32 %v1051_v29, %v1050_v34 }
 0x164   : > { %v1143_v4 = vmul.f32 %v3272_v45, %v3272_v45  ;;  %v996_v40 = vpop.f32.mrb[27].mxu1  ;;  %v1142_v21 = vmul.f32 %v3279_v8, %v3279_v8  ;;  %v1060_v6 = vsel %vm1023_vm1, %v3272_v45, 0.0 }
 0x165   : > { %1197 = vadd.xlane.f32.xlu1 %v1196_v51  ;;  %v1205_v59 = vadd.f32 %v1204_v35, %v1203_v44  ;;  %v1059_v42 = vadd.f32 %v1058_v14, %v3279_v8  ;;  %v1211_v16 = vadd.f32 %v3113_v48, %v1141_v9 }
 0x166   : > { %v3289_v10 = vpop.f32.mrb[28].mxu0  ;;  %v1213_v40 = vsel %vm1023_vm1, %v1143_v4, 0.0 }
 0x167   : > { %4071 = vst [vmem:[#allocation20_spill] sm:$0xff] %v3289_v10  ;;  %v3291_v30 = vpop.f32.mrb[28].mxu1  ;;  %v1067_v25 = vadd.f32 %v3135_v11, %v3289_v10  ;;  %v1148_v56 = vmul.f32 %v3289_v10, %v3289_v10  ;;  %1206 = vadd.xlane.f32.xlu0 %v1205_v59  ;;  %v3298_v34 = vpop.f32.mrb[29].mxu0  ;;  %v1061_v48 = vadd.f32 %v1060_v6, %v1059_v42 }
 0x168   : > { %4072 = vst [vmem:[#allocation21_spill] sm:$0xff] %v3291_v30  ;;  %4073 = vst [vmem:[#allocation22_spill] sm:$0xff] %v3298_v34  ;;  %v1150_v51 = vmul.f32 %v3291_v30, %v3291_v30  ;;  %v1001_v29 = vpop.f32.mrb[29].mxu1  ;;  %v1149_v35 = vmul.f32 %v3298_v34, %v3298_v34  ;;  %v1212_v14 = vadd.f32 %v1211_v16, %v1142_v21  ;;  %v1069_v4 = vsel %vm1023_vm1, %v3291_v30, 0.0 }
 0x169   : > { %1053 = vadd.xlane.f32.xlu1 %v1052_v32  ;;  %v1220_v9 = vadd.f32 %v3137_v15, %v1148_v56  ;;  %v1068_v11 = vadd.f32 %v1067_v25, %v3298_v34 }
 0x16a   : > { %v3308_v44 = vpop.f32.mrb[30].mxu0  ;;  %v1214_v10 = vadd.f32 %v1213_v40, %v1212_v14  ;;  %v1222_v29 = vsel %vm1023_vm1, %v1150_v51, 0.0 }
 0x16b   : > { %4074 = vst [vmem:[#allocation23_spill] sm:$0xff] %v3308_v44  ;;  %v3310_v59 = vpop.f32.mrb[30].mxu1  ;;  %v1076_v6 = vadd.f32 %v3159_v13, %v3308_v44  ;;  %v1155_v21 = vmul.f32 %v3308_v44, %v3308_v44  ;;  %1062 = vadd.xlane.f32.xlu0 %v1061_v48  ;;  %v3317_v15 = vpop.f32.mrb[31].mxu0  ;;  %v1221_v16 = vadd.f32 %v1220_v9, %v1149_v35 }
 0x16c   : > { %4075 = vst [vmem:[#allocation24_spill] sm:$0xff] %v3310_v59  ;;  %4076 = vst [vmem:[#allocation25_spill] sm:$0xff] %v3317_v15  ;;  %v1157_v32 = vmul.f32 %v3310_v59, %v3310_v59  ;;  %v1006_v42 = vpop.f32.mrb[31].mxu1  ;;  %v1156_v25 = vmul.f32 %v3317_v15, %v3317_v15  ;;  %v1070_v40 = vadd.f32 %v1069_v4, %v1068_v11  ;;  %v1078_v56 = vsel %vm1023_vm1, %v3310_v59, 0.0 }
 0x16d   : > { %1215 = vadd.xlane.f32.xlu1 %v1214_v10  ;;  %v1223_v13 = vadd.f32 %v1222_v29, %v1221_v16  ;;  %v1077_v51 = vadd.f32 %v1076_v6, %v3317_v15  ;;  %v1229_v48 = vadd.f32 %v3161_v39, %v1155_v21 }
 0x16e   : > { %v3327_v14 = vpop.f32.mrb[32].mxu0  ;;  %v1231_v42 = vsel %vm1023_vm1, %v1157_v32, 0.0 }
 0x16f   : > { %4077 = vst [vmem:[#allocation26_spill] sm:$0xff] %v3327_v14  ;;  %v3329_v30 = vpop.f32.mrb[32].mxu1  ;;  %v1085_v35 = vadd.f32 %v3183_v23, %v3327_v14  ;;  %v1162_v9 = vmul.f32 %v3327_v14, %v3327_v14  ;;  %1224 = vadd.xlane.f32.xlu0 %v1223_v13  ;;  %v3336_v11 = vpop.f32.mrb[33].mxu0  ;;  %v1079_v39 = vadd.f32 %v1078_v56, %v1077_v51 }
 0x170   : > { %4078 = vst [vmem:[#allocation27_spill] sm:$0xff] %v3329_v30  ;;  %4079 = vst [vmem:[#allocation28_spill] sm:$0xff] %v3336_v11  ;;  %v1164_v10 = vmul.f32 %v3329_v30, %v3329_v30  ;;  %v1011_v4 = vpop.f32.mrb[33].mxu1  ;;  %v1163_v29 = vmul.f32 %v3336_v11, %v3336_v11  ;;  %v1230_v6 = vadd.f32 %v1229_v48, %v1156_v25  ;;  %v1087_v21 = vsel %vm1023_vm1, %v3329_v30, 0.0 }
 0x171   : > { %1071 = vadd.xlane.f32.xlu1 %v1070_v40  ;;  %v1086_v23 = vadd.f32 %v1085_v35, %v3336_v11  ;;  %v1238_v32 = vadd.f32 %v3185_v18, %v1162_v9 }
 0x172   : > { %v3346_v16 = vpop.f32.mrb[34].mxu0  ;;  %v1232_v14 = vadd.f32 %v1231_v42, %v1230_v6  ;;  %v1240_v4 = vsel %vm1023_vm1, %v1164_v10, 0.0 }
 0x173   : > { %4080 = vst [vmem:[#allocation29_spill] sm:$0xff] %v3346_v16  ;;  %v3348_v13 = vpop.f32.mrb[34].mxu1  ;;  %v1094_v56 = vadd.f32 %v3191_v33, %v3346_v16  ;;  %v1169_v25 = vmul.f32 %v3346_v16, %v3346_v16  ;;  %1080 = vadd.xlane.f32.xlu0 %v1079_v39  ;;  %v3355_v51 = vpop.f32.mrb[35].mxu0  ;;  %v1088_v48 = vadd.f32 %v1087_v21, %v1086_v23  ;;  %v2161_v23 = vmov 0  }
 0x174   : > { %4081 = vst [vmem:[#allocation30_spill] sm:$0xff] %v3348_v13  ;;  %4082 = vst [vmem:[#allocation31_spill] sm:$0xff] %v3355_v51  ;;  %v1171_v40 = vmul.f32 %v3348_v13, %v3348_v13  ;;  %v1016_v18 = vpop.f32.mrb[35].mxu1  ;;  %v1170_v35 = vmul.f32 %v3355_v51, %v3355_v51  ;;  %v1096_v42 = vsel %vm1023_vm1, %v3348_v13, 0.0  ;;  %v1239_v9 = vadd.f32 %v1238_v32, %v1163_v29 }
 0x175   : > { %v1095_v33 = vadd.f32 %v1094_v56, %v3355_v51  ;;  %1233 = vadd.xlane.f32.xlu1 %v1232_v14  ;;  %v1247_v10 = vadd.f32 %v3193_v37, %v1169_v25  ;;  %2126 = vset.pattern.permute.xlu0 %v2161_v23 }
 0x176   : > { %v1249_v39 = vsel %vm1023_vm1, %v1171_v40, 0.0  ;;  %v1241_v6 = vadd.f32 %v1240_v4, %v1239_v9  ;;  %2125 = vset.pattern.permute.xlu1 %v2161_v23 }
 0x177   : > { %v1097_v30 = vadd.f32 %v1096_v42, %v1095_v33  ;;  %v1248_v16 = vadd.f32 %v1247_v10, %v1170_v35 }
 0x179   : > { %1089 = vadd.xlane.f32.xlu1 %v1088_v48  ;;  %1098 = vadd.xlane.f32.xlu0 %v1097_v30  ;;  %v1250_v21 = vadd.f32 %v1249_v39, %v1248_v16 }
 0x17d   : > { %1251 = vadd.xlane.f32.xlu1 %v1250_v21  ;;  %1242 = vadd.xlane.f32.xlu0 %v1241_v6 }
 0x1e6   : > { %v1027_v18 = vpop.xlane.xlu0 %1026 }
 0x1e7   : > { %v1100_v29 = vmul.f32 0.0012755102, %v1027_v18 }
 0x1e8   : > { %v1180_v56 = vpop.xlane.xlu1 %1179 }
 0x1e9   : > { %v1262_v32 = vmul.f32 %v1100_v29, %v1100_v29  ;;  %v1253_v14 = vmul.f32 0.0012755102, %v1180_v56 }
 0x1ea   : > { %v1036_v13 = vpop.xlane.xlu0 %1035 }
 0x1eb   : > { %v1101_v37 = vmul.f32 0.0012755102, %v1036_v13  ;;  %v1271_v25 = vsub.f32 %v1253_v14, %v1262_v32 }
 0x1ed   : > { %v1280_v4 = vmax.f32 %v1271_v25, 0.0  ;;  %v1263_v48 = vmul.f32 %v1101_v37, %v1101_v37 }
 0x1ee   : > { %v1189_v40 = vpop.xlane.xlu0 %1188  ;;  %v1045_v35 = vpop.xlane.xlu1 %1044 }
 0x1ef   : > { %v1254_v30 = vmul.f32 0.0012755102, %v1189_v40  ;;  %v3366_v16 = vmul.f32 0.0012755102, %v1045_v35  ;;  %v1298_v42 = vadd.f32 1e-05, %v1280_v4 }
 0x1f1   : > { %v1272_v9 = vsub.f32 %v1254_v30, %v1263_v48  ;;  %2133 = vrsqrt.f32 %v1298_v42  ;;  %v1264_v39 = vmul.f32 %v3366_v16, %v3366_v16  ;;  %v3383_v30 = vld [vmem:[%s3374_s20] sm:$0xff] }
 0x1f2   : > { %v1198_v33 = vpop.xlane.xlu1 %1197 }
 0x1f3   : > { %v1281_v10 = vmax.f32 %v1272_v9, 0.0  ;;  %v1255_v6 = vmul.f32 0.0012755102, %v1198_v33 }
 0x1f4   : > { %v1207_v21 = vpop.xlane.xlu0 %1206 }
 0x1f5   : > { %v1299_v13 = vadd.f32 1e-05, %v1281_v10  ;;  %v1273_v23 = vsub.f32 %v1255_v6, %v1264_v39  ;;  %v1256_v4 = vmul.f32 0.0012755102, %v1207_v21 }
 0x1f6   : > { %v1054_v18 = vpop.xlane.xlu1 %1053 }
 0x1f7   : > { %2135 = vrsqrt.f32 %v1299_v13  ;;  %v1282_v32 = vmax.f32 %v1273_v23, 0.0  ;;  %v3376_v56 = vmul.f32 0.0012755102, %v1054_v18 }
 0x1f8   : > { %v1063_v14 = vpop.xlane.xlu0 %1062 }
 0x1f9   : > { %v1300_v25 = vadd.f32 1e-05, %v1282_v32  ;;  %v1265_v40 = vmul.f32 %v3376_v56, %v3376_v56  ;;  %v3380_v35 = vmul.f32 0.0012755102, %v1063_v14 }
 0x1fa   : > { %v1216_v48 = vpop.xlane.xlu1 %1215 }
 0x1fb   : > { %2137 = vrsqrt.f32 %v1300_v25  ;;  %v1274_v42 = vsub.f32 %v1256_v4, %v1265_v40  ;;  %v1266_v9 = vmul.f32 %v3380_v35, %v3380_v35  ;;  %v1257_v33 = vmul.f32 0.0012755102, %v1216_v48  ;;  %v2134_v10 = vpop.eup %2133  ;;  %v3394_v25 = vld [vmem:[%s3374_s20 + $0x8] sm:$0xff] }
 0x1fc   : > { %v1225_v39 = vpop.xlane.xlu0 %1224  ;;  %v3388_v21 = vmul.f32 %v2134_v10, %v3383_v30 }
 0x1fd   : > { %v1283_v6 = vmax.f32 %v1274_v42, 0.0  ;;  %v1275_v13 = vsub.f32 %v1257_v33, %v1266_v9  ;;  %v1258_v4 = vmul.f32 0.0012755102, %v1225_v39 }
 0x1fe   : > { %v1072_v23 = vpop.xlane.xlu1 %1071  ;;  %v1325_v51 = vmul.f32 %v3388_v21, %v1100_v29 }
 0x1ff   : > { %v1301_v18 = vadd.f32 1e-05, %v1283_v6  ;;  %v1284_v32 = vmax.f32 %v1275_v13, 0.0  ;;  %v3390_v14 = vmul.f32 0.0012755102, %v1072_v23  ;;  %v3403_v13 = vld [vmem:[%s3374_s20 + $0x10] sm:$0xff] }
 0x200   : > { %v1081_v40 = vpop.xlane.xlu0 %1080  ;;  %1343 = vrot.lane.b32.xlu0 %v1325_v51, %s2162_s21 }
 0x201   : > { %v2136_v48 = vpop.eup %2135  ;;  %2139 = vrsqrt.f32 %v1301_v18  ;;  %v1302_v11 = vadd.f32 1e-05, %v1284_v32  ;;  %v1267_v42 = vmul.f32 %v3390_v14, %v3390_v14  ;;  %v1106_v9 = vmul.f32 0.0012755102, %v1081_v40 }
 0x202   : > { %v1234_v33 = vpop.xlane.xlu1 %1233  ;;  %v3400_v10 = vmul.f32 %v2136_v48, %v3394_v25 }
 0x203   : > { %2141 = vrsqrt.f32 %v1302_v11  ;;  %v1276_v29 = vsub.f32 %v1258_v4, %v1267_v42  ;;  %v1268_v6 = vmul.f32 %v1106_v9, %v1106_v9  ;;  %v1259_v39 = vmul.f32 0.0012755102, %v1234_v33  ;;  %v3410_v33 = vld [vmem:[%s3374_s20 + $0x18] sm:$0xff] }
 0x204   : > { %v1326_v23 = vmul.f32 %v3400_v10, %v1101_v37 }
 0x205   : > { %v2138_v18 = vpop.eup %2137  ;;  %v1285_v32 = vmax.f32 %v1276_v29, 0.0  ;;  %v1277_v34 = vsub.f32 %v1259_v39, %v1268_v6 }
 0x206   : > { %v1090_v40 = vpop.xlane.xlu1 %1089  ;;  %1345 = vrot.lane.b32.xlu1 %v1326_v23, %s2162_s21  ;;  %v1099_v51 = vpop.xlane.xlu0 %1098  ;;  %v1318_v59 = vmul.f32 %v2138_v18, %v3403_v13 }
 0x207   : > { %v1303_v48 = vadd.f32 1e-05, %v1285_v32  ;;  %v1286_v15 = vmax.f32 %v1277_v34, 0.0  ;;  %v1107_v11 = vmul.f32 0.0012755102, %v1090_v40  ;;  %v1293_v32 = vld [vmem:[%s3374_s20 + $0x20] sm:$0xff] }
 0x208   : > { %v1108_v4 = vmul.f32 0.0012755102, %v1099_v51  ;;  %v1327_v42 = vmul.f32 %v1318_v59, %v3366_v16 }
 0x209   : > { %2143 = vrsqrt.f32 %v1303_v48  ;;  %v1304_v37 = vadd.f32 1e-05, %v1286_v15  ;;  %v1269_v44 = vmul.f32 %v1107_v11, %v1107_v11 }
 0x20a   : > { %1347 = vrot.lane.b32.xlu1 %v1327_v42, %s2162_s21  ;;  %v1252_v29 = vpop.xlane.xlu1 %1251  ;;  %v1243_v6 = vpop.xlane.xlu0 %1242  ;;  %v1270_v23 = vmul.f32 %v1108_v4, %v1108_v4 }
 0x20b   : > { %v2140_v39 = vpop.eup %2139  ;;  %2145 = vrsqrt.f32 %v1304_v37  ;;  %v1261_v18 = vmul.f32 0.0012755102, %v1252_v29  ;;  %v1260_v34 = vmul.f32 0.0012755102, %v1243_v6  ;;  %v1294_v37 = vld [vmem:[%s3374_s20 + $0x28] sm:$0xff] }
 0x20c   : > { %v1319_v40 = vmul.f32 %v2140_v39, %v3410_v33 }
 0x20d   : > { %v2142_v16 = vpop.eup %2141  ;;  %v1279_v51 = vsub.f32 %v1261_v18, %v1270_v23  ;;  %v1278_v41 = vsub.f32 %v1260_v34, %v1269_v44  ;;  %v1295_v23 = vld [vmem:[%s3374_s20 + $0x30] sm:$0xff] }
 0x20e   : > { %v1328_v15 = vmul.f32 %v1319_v40, %v3376_v56  ;;  %v1320_v48 = vmul.f32 %v2142_v16, %v1293_v32  ;;  %v1296_v16 = vld [vmem:[%s3374_s20 + $0x38] sm:$0xff] }
 0x20f   : > { %v1288_v3 = vmax.f32 %v1279_v51, 0.0  ;;  %v1287_v42 = vmax.f32 %v1278_v41, 0.0 }
 0x210   : > { %1349 = vrot.lane.b32.xlu1 %v1328_v15, %s2162_s21  ;;  %v1329_v7 = vmul.f32 %v1320_v48, %v3380_v35  ;;  %v1297_v35 = vld [vmem:[%s3374_s20 + $0x40] sm:$0xff] }
 0x211   : > { %v1306_v29 = vadd.f32 1e-05, %v1288_v3  ;;  %v1305_v6 = vadd.f32 1e-05, %v1287_v42 }
 0x212   : > { %1351 = vrot.lane.b32.xlu0 %v1329_v7, %s2162_s21 }
 0x213   : > { %v2144_v39 = vpop.eup %2143  ;;  %2147 = vrsqrt.f32 %v1306_v29 }
 0x214   : > { %v1321_v44 = vmul.f32 %v2144_v39, %v1294_v37  ;;  %2149 = vrsqrt.f32 %v1305_v6 }
 0x215   : > { %v2146_v56 = vpop.eup %2145 }
 0x216   : > { %v1330_v18 = vmul.f32 %v1321_v44, %v3390_v14  ;;  %v1322_v41 = vmul.f32 %v2146_v56, %v1295_v23  ;;  %v2163_v14 = vmov 1  }
 0x218   : > { %1353 = vrot.lane.b32.xlu1 %v1330_v18, %s2162_s21  ;;  %v1331_v34 = vmul.f32 %v1322_v41, %v1106_v9 }
 0x21a   : > { %1355 = vrot.lane.b32.xlu0 %v1331_v34, %s2162_s21 }
 0x21d   : > { %v2148_v3 = vpop.eup %2147 }
 0x21e   : > { %v2150_v51 = vpop.eup %2149  ;;  %v1324_v15 = vmul.f32 %v2148_v3, %v1297_v35 }
 0x21f   : > { %v1323_v7 = vmul.f32 %v2150_v51, %v1296_v16 }
 0x220   : > { %v1333_v42 = vmul.f32 %v1324_v15, %v1108_v4 }
 0x221   : > { %v1332_v29 = vmul.f32 %v1323_v7, %v1107_v11 }
 0x222   : > { %1359 = vrot.lane.b32.xlu0 %v1333_v42, %s2162_s21 }
 0x223   : > { %1357 = vrot.lane.b32.xlu1 %v1332_v29, %s2162_s21  ;;  %v1379_v29 = vld [vmem:[%s3442_s25] sm:$0xff] }
 0x226   : > { %1449 = vperm.xlu0 %2126, %v3400_v10  }
 0x227   : > { %1444 = vperm.xlu1 %2125, %v3388_v21  }
 0x22a   : > { %1464 = vperm.xlu0 %2126, %v1320_v48  }
 0x22b   : > { %1454 = vperm.xlu1 %2125, %v1318_v59  }
 0x22e   : > { %1474 = vperm.xlu0 %2126, %v1322_v41  }
 0x22f   : > { %1459 = vperm.xlu1 %2125, %v1319_v40  }
 0x232   : > { %1484 = vperm.xlu0 %2126, %v1324_v15  }
 0x233   : > { %1469 = vperm.xlu1 %2125, %v1321_v44  }
 0x236   : > { %2128 = vset.pattern.permute.xlu0 %v2163_v14 }
 0x237   : > { %1479 = vperm.xlu1 %2125, %v1323_v7  }
 0x23b   : > { %2127 = vset.pattern.permute.xlu1 %v2163_v14  ;;  %v1380_v14 = vld [vmem:[%s3442_s25 + $0x8] sm:$0xff] }
 0x272   : > { %v1344_v9 = vpop.permute.xlu0 %1343 }
 0x273   : > { %v1370_v11 = vsub.f32 %v3383_v30, %v1344_v9 }
 0x275   : > { %1615 = vperm.xlu1 %2127, %v1370_v11  }
 0x278   : > { %v1346_v4 = vpop.permute.xlu1 %1345 }
 0x279   : > { %v1371_v6 = vsub.f32 %v3394_v25, %v1346_v4 }
 0x27b   : > { %1620 = vperm.xlu0 %2128, %v1371_v6   ;;  %v1382_v6 = vld [vmem:[%s3442_s25 + $0x18] sm:$0xff] }
 0x27c   : > { %v1348_v10 = vpop.permute.xlu1 %1347 }
 0x27d   : > { %v1372_v21 = vsub.f32 %v3403_v13, %v1348_v10 }
 0x27f   : > { %1625 = vperm.xlu1 %2127, %v1372_v21  }
 0x282   : > { %v1350_v59 = vpop.permute.xlu1 %1349 }
 0x283   : > { %v1373_v40 = vsub.f32 %v3410_v33, %v1350_v59 }
 0x284   : > { %v1352_v48 = vpop.permute.xlu0 %1351 }
 0x285   : > { %v1374_v39 = vsub.f32 %v1293_v32, %v1352_v48  ;;  %1630 = vperm.xlu1 %2127, %v1373_v40  }
 0x287   : > { %1635 = vperm.xlu0 %2128, %v1374_v39  }
 0x28a   : > { %v1354_v44 = vpop.permute.xlu1 %1353 }
 0x28b   : > { %v1375_v56 = vsub.f32 %v1294_v37, %v1354_v44  ;;  %v4094_v44 = vld [vmem:[#allocation3_spill] sm:$0xff] }
 0x28c   : > { %v1356_v30 = vpop.permute.xlu0 %1355 }
 0x28d   : > { %v1376_v18 = vsub.f32 %v1295_v23, %v1356_v30  ;;  %1640 = vperm.xlu1 %2127, %v1375_v56  }
 0x28f   : > { %1645 = vperm.xlu0 %2128, %v1376_v18   ;;  %v4097_v18 = vld [vmem:[#allocation17_spill] sm:$0xff] }
 0x294   : > { %v1360_v25 = vpop.permute.xlu0 %1359 }
 0x295   : > { %v1358_v41 = vpop.permute.xlu1 %1357  ;;  %v1378_v34 = vsub.f32 %v1297_v35, %v1360_v25  ;;  %v3572_v25 = vld [vmem:[%s3442_s25 + $0x38] sm:$0xff] }
 0x296   : > { %v1377_v13 = vsub.f32 %v1296_v16, %v1358_v41  ;;  %v3575_v41 = vld [vmem:[%s3442_s25 + $0x40] sm:$0xff] }
 0x297   : > { %1655 = vperm.xlu0 %2128, %v1378_v34   ;;  %v3578_v34 = vld [vmem:[%s3442_s25 + $0x48] sm:$0xff] }
 0x298   : > { %1650 = vperm.xlu1 %2127, %v1377_v13   ;;  %v3581_v13 = vld [vmem:[%s3442_s25 + $0x50] sm:$0xff] }
 0x2a5   : > { %v1450_v51 = vpop.permute.xlu0 %1449 }
 0x2a6   : > { %v1445_v3 = vpop.permute.xlu1 %1444  ;;  %v3447_v16 = vmul.f32 %v1450_v51, %v2998_v62  ;;  %v3450_v15 = vmul.f32 %v1450_v51, %v3004_v27  ;;  %v3453_v7 = vmul.f32 %v1450_v51, %v3000_v12  ;;  %v3468_v27 = vmul.f32 %v1450_v51, %v3213_v38 }
 0x2a7   : > { %v1487_v23 = vmul.f32 %v1445_v3, %v2979_v43  ;;  %v1488_v35 = vmul.f32 %v1445_v3, %v2985_v5  ;;  %v1489_v9 = vmul.f32 %v1445_v3, %v2981_v57  ;;  %v1490_v11 = vmul.f32 %v1445_v3, %v2987_v17 }
 0x2a8   : > { %v1491_v43 = vmul.f32 %v1445_v3, %v3195_v46  ;;  %v3463_v5 = vmul.f32 %v1450_v51, %v3008_v36  ;;  %v1492_v62 = vmul.f32 %v1445_v3, %v3203_v58  ;;  %v1493_v12 = vmul.f32 %v1445_v3, %v3197_v0  ;;  %v4098_v3 = vld [vmem:[#allocation19_spill] sm:$0xff] }
 0x2a9   : > { %v1465_v37 = vpop.permute.xlu0 %1464  ;;  %v3471_v4 = vmul.f32 %v1450_v51, %v3222_v54  ;;  %v3474_v57 = vmul.f32 %v1450_v51, %v3215_v31  ;;  %v3479_v46 = vadd.f32 %v1487_v23, %v1379_v29  ;;  %v3481_v36 = vadd.f32 %v1488_v35, %v1380_v14  ;;  %v1381_v31 = vld [vmem:[%s3442_s25 + $0x10] sm:$0xff]  ;;  %v3595_v29 = vld [vmem:[%s3442_s25 + $0x58] sm:$0xff]  ;;  %v3598_v14 = vld [vmem:[%s3442_s25 + $0x60] sm:$0xff] }
 0x2aa   : > { %v1455_v33 = vpop.permute.xlu1 %1454  ;;  %v3477_v17 = vmul.f32 %v1465_v37, %v3068_v20  ;;  %v3487_v0 = vmul.f32 %v1465_v37, %v3076_v24  ;;  %v3490_v38 = vmul.f32 %v1465_v37, %v3072_v22  ;;  %v3493_v54 = vmul.f32 %v1465_v37, %v3080_v26 }
 0x2ab   : > { %v3484_v58 = vmul.f32 %v1455_v33, %v3020_v47  ;;  %v3500_v10 = vmul.f32 %v1455_v33, %v3028_v50  ;;  %v3503_v47 = vmul.f32 %v1455_v33, %v3024_v49  ;;  %v3506_v24 = vmul.f32 %v1455_v33, %v3032_v53 }
 0x2ac   : > { %4083 = vst [vmem:[#allocation32_spill] sm:$0xff] %v3477_v17  ;;  %4084 = vst [vmem:[#allocation33_spill] sm:$0xff] %v3487_v0  ;;  %v3509_v22 = vmul.f32 %v1455_v33, %v3232_v28  ;;  %v3512_v26 = vmul.f32 %v1455_v33, %v3241_v19  ;;  %v3515_v21 = vmul.f32 %v1455_v33, %v3234_v61  ;;  %v1383_v61 = vld [vmem:[%s3442_s25 + $0x20] sm:$0xff]  ;;  %v1384_v19 = vld [vmem:[%s3442_s25 + $0x28] sm:$0xff] }
 0x2ad   : > { %4085 = vst [vmem:[#allocation34_spill] sm:$0xff] %v3490_v38  ;;  %4086 = vst [vmem:[#allocation35_spill] sm:$0xff] %v3493_v54  ;;  %v3495_v20 = vpop.permute.xlu0 %1474  ;;  %v3518_v59 = vmul.f32 %v1465_v37, %v3270_v63  ;;  %v3521_v50 = vmul.f32 %v1465_v37, %v3279_v8  ;;  %v3526_v53 = vmul.f32 %v1465_v37, %v3272_v45  ;;  %v1385_v63 = vld [vmem:[%s3442_s25 + $0x30] sm:$0xff]  ;;  %v3667_v54 = vld [vmem:[%s3442_s25 + $0x118] sm:$0xff] }
 0x2ae   : > { %v3435_v32 = vpop.permute.xlu1 %1459  ;;  %v3530_v28 = vmul.f32 %v3495_v20, %v3116_v52  ;;  %v3535_v40 = vadd.f32 %v1489_v9, %v1381_v31  ;;  %v3537_v8 = vadd.f32 %v1490_v11, %v1382_v6  ;;  %v3545_v45 = vmul.f32 %v3495_v20, %v3124_v60  ;;  %v4096_v60 = vld [vmem:[#allocation4_spill] sm:$0xff]  ;;  %v3601_v9 = vld [vmem:[%s3442_s25 + $0x68] sm:$0xff]  ;;  %v3607_v31 = vld [vmem:[%s3442_s25 + $0x78] sm:$0xff]  ;;  %4106 = vst [vmem:[#allocation45_spill] sm:$0xff] %v3667_v54 }
 0x2af   : > { %4087 = vst [vmem:[#allocation36_spill] sm:$0xff] %v3518_v59  ;;  %4088 = vst [vmem:[#allocation37_spill] sm:$0xff] %v3521_v50  ;;  %v3541_v48 = vmul.f32 %v3435_v32, %v3044_v1  ;;  %v3549_v52 = vmul.f32 %v3495_v20, %v3120_v55  ;;  %v3553_v39 = vmul.f32 %v3495_v20, %v3128_v2  ;;  %v4095_v1 = vld [vmem:[#allocation2_spill] sm:$0xff]  ;;  %v3604_v11 = vld [vmem:[%s3442_s25 + $0x70] sm:$0xff] }
 0x2b0   : > { %4089 = vst [vmem:[#allocation38_spill] sm:$0xff] %v3526_v53  ;;  %4090 = vst [vmem:[#allocation39_spill] sm:$0xff] %v3530_v28  ;;  %v3557_v56 = vmul.f32 %v3435_v32, %v4094_v44  ;;  %v3561_v30 = vmul.f32 %v3435_v32, %v4095_v1  ;;  %v3565_v55 = vmul.f32 %v3435_v32, %v4096_v60  ;;  %v3619_v6 = vld [vmem:[%s3442_s25 + $0x98] sm:$0xff]  ;;  %v3634_v1 = vld [vmem:[%s3442_s25 + $0xc0] sm:$0xff] }
 0x2b1   : > { %4091 = vst [vmem:[#allocation40_spill] sm:$0xff] %v3545_v45  ;;  %4092 = vst [vmem:[#allocation41_spill] sm:$0xff] %v3549_v52  ;;  %v3569_v2 = vmul.f32 %v3435_v32, %v4097_v18  ;;  %v3592_v33 = vmul.f32 %v3435_v32, %v4098_v3  ;;  %v1554_v37 = vadd.f32 %v1491_v43, %v1383_v61  ;;  %v3610_v43 = vld [vmem:[%s3442_s25 + $0x80] sm:$0xff]  ;;  %v3631_v44 = vld [vmem:[%s3442_s25 + $0xb8] sm:$0xff] }
 0x2b2   : > { %v3455_v42 = vpop.permute.xlu1 %1469  ;;  %4093 = vst [vmem:[#allocation42_spill] sm:$0xff] %v3553_v39  ;;  %v1555_v23 = vadd.f32 %v1492_v62, %v1384_v19  ;;  %v1556_v35 = vadd.f32 %v1493_v12, %v1385_v63  ;;  %v3613_v62 = vld [vmem:[%s3442_s25 + $0x88] sm:$0xff]  ;;  %v3616_v12 = vld [vmem:[%s3442_s25 + $0x90] sm:$0xff]  ;;  %v3622_v61 = vld [vmem:[%s3442_s25 + $0xa0] sm:$0xff] }
 0x2b3   : > { %v3625_v19 = vld [vmem:[%s3442_s25 + $0xa8] sm:$0xff]  ;;  %v3628_v63 = vld [vmem:[%s3442_s25 + $0xb0] sm:$0xff]  ;;  %v3643_v3 = vld [vmem:[%s3442_s25 + $0xd8] sm:$0xff] }
 0x2b4   : > { %v3637_v60 = vld [vmem:[%s3442_s25 + $0xc8] sm:$0xff]  ;;  %v3640_v18 = vld [vmem:[%s3442_s25 + $0xd0] sm:$0xff]  ;;  %v3646_v39 = vld [vmem:[%s3442_s25 + $0xe0] sm:$0xff] }
 0x2b5   : > { %4099 = vst [vmem:[#allocation3_spill] sm:$0xff] %v3646_v39  ;;  %v3649_v52 = vld [vmem:[%s3442_s25 + $0xe8] sm:$0xff]  ;;  %v3652_v45 = vld [vmem:[%s3442_s25 + $0xf0] sm:$0xff]  ;;  %v3655_v28 = vld [vmem:[%s3442_s25 + $0xf8] sm:$0xff] }
 0x2b6   : > { %v3523_v49 = vpop.permute.xlu1 %1479  ;;  %4100 = vst [vmem:[#allocation2_spill] sm:$0xff] %v3649_v52  ;;  %4101 = vst [vmem:[#allocation4_spill] sm:$0xff] %v3652_v45  ;;  %v3658_v53 = vld [vmem:[%s3442_s25 + $0x100] sm:$0xff]  ;;  %v3661_v50 = vld [vmem:[%s3442_s25 + $0x108] sm:$0xff] }
 0x2b7   : > { %4102 = vst [vmem:[#allocation17_spill] sm:$0xff] %v3655_v28  ;;  %4103 = vst [vmem:[#allocation19_spill] sm:$0xff] %v3658_v53  ;;  %v3664_v59 = vld [vmem:[%s3442_s25 + $0x110] sm:$0xff]  ;;  %v3670_v38 = vld [vmem:[%s3442_s25 + $0x120] sm:$0xff] }
 0x2b8   : > { %4104 = vst [vmem:[#allocation43_spill] sm:$0xff] %v3661_v50  ;;  %4105 = vst [vmem:[#allocation44_spill] sm:$0xff] %v3664_v59  ;;  %v3673_v45 = vld [vmem:[%s3442_s25 + $0x128] sm:$0xff]  ;;  %v3676_v28 = vld [vmem:[%s3442_s25 + $0x130] sm:$0xff] }
 0x2b9   : > { %4107 = vst [vmem:[#allocation46_spill] sm:$0xff] %v3670_v38  ;;  %4108 = vst [vmem:[#allocation47_spill] sm:$0xff] %v3673_v45  ;;  %v3679_v53 = vld [vmem:[%s3442_s25 + $0x138] sm:$0xff]  ;;  %v3682_v50 = vld [vmem:[%s3442_s25 + $0x140] sm:$0xff] }
 0x2ba   : > { %4109 = vst [vmem:[#allocation48_spill] sm:$0xff] %v3676_v28  ;;  %4110 = vst [vmem:[#allocation49_spill] sm:$0xff] %v3679_v53  ;;  %v3685_v59 = vld [vmem:[%s3442_s25 + $0x148] sm:$0xff]  ;;  %v3688_v0 = vld [vmem:[%s3442_s25 + $0x150] sm:$0xff] }
 0x2bb   : > { %4111 = vst [vmem:[#allocation50_spill] sm:$0xff] %v3682_v50  ;;  %4112 = vst [vmem:[#allocation51_spill] sm:$0xff] %v3685_v59  ;;  %v3691_v54 = vld [vmem:[%s3442_s25 + $0x158] sm:$0xff]  ;;  %v3694_v38 = vld [vmem:[%s3442_s25 + $0x160] sm:$0xff] }
 0x2bc   : > { %4113 = vst [vmem:[#allocation52_spill] sm:$0xff] %v3688_v0  ;;  %4114 = vst [vmem:[#allocation53_spill] sm:$0xff] %v3691_v54  ;;  %v3697_v52 = vld [vmem:[%s3442_s25 + $0x168] sm:$0xff]  ;;  %v3700_v45 = vld [vmem:[%s3442_s25 + $0x170] sm:$0xff] }
 0x2bd   : > { %4115 = vst [vmem:[#allocation54_spill] sm:$0xff] %v3694_v38  ;;  %4116 = vst [vmem:[#allocation55_spill] sm:$0xff] %v3697_v52  ;;  %v3703_v28 = vld [vmem:[%s3442_s25 + $0x178] sm:$0xff]  ;;  %v3706_v53 = vld [vmem:[%s3442_s25 + $0x180] sm:$0xff] }
 0x2be   : > { %4117 = vst [vmem:[#allocation56_spill] sm:$0xff] %v3700_v45  ;;  %4118 = vst [vmem:[#allocation57_spill] sm:$0xff] %v3703_v28  ;;  %v3709_v50 = vld [vmem:[%s3442_s25 + $0x188] sm:$0xff]  ;;  %v3712_v59 = vld [vmem:[%s3442_s25 + $0x190] sm:$0xff] }
 0x2bf   : > { %4119 = vst [vmem:[#allocation58_spill] sm:$0xff] %v3706_v53  ;;  %4120 = vst [vmem:[#allocation59_spill] sm:$0xff] %v3709_v50  ;;  %v3715_v0 = vld [vmem:[%s3442_s25 + $0x198] sm:$0xff]  ;;  %v3718_v54 = vld [vmem:[%s3442_s25 + $0x1a0] sm:$0xff]  ;;  %v3732_v53 = vpop.permute.xlu0 %1484 }
 0x2c0   : > { %4121 = vst [vmem:[#allocation60_spill] sm:$0xff] %v3712_v59  ;;  %4122 = vst [vmem:[#allocation61_spill] sm:$0xff] %v3715_v0  ;;  %v3721_v38 = vld [vmem:[%s3442_s25 + $0x1c0] sm:$0xff]  ;;  %v3724_v52 = vld [vmem:[%s3442_s25 + $0x1c8] sm:$0xff] }
 0x2c1   : > { %4123 = vst [vmem:[#allocation62_spill] sm:$0xff] %v3718_v54  ;;  %4124 = vst [vmem:[#allocation63_spill] sm:$0xff] %v3721_v38  ;;  %v3727_v45 = vld [vmem:[%s3442_s25 + $0x1d0] sm:$0xff]  ;;  %v3730_v28 = vld [vmem:[%s3442_s25 + $0x1d8] sm:$0xff] }
 0x2c2   : > { %4125 = vst [vmem:[#allocation64_spill] sm:$0xff] %v3724_v52  ;;  %4126 = vst [vmem:[#allocation65_spill] sm:$0xff] %v3727_v45  ;;  %v3739_v54 = vld [vmem:[%s3442_s25 + $0x1a8] sm:$0xff]  ;;  %v3742_v52 = vld [vmem:[%s3442_s25 + $0x1b0] sm:$0xff] }
 0x2c3   : > { %4127 = vst [vmem:[#allocation66_spill] sm:$0xff] %v3730_v28  ;;  %4128 = vst [vmem:[#allocation67_spill] sm:$0xff] %v3732_v53  ;;  %v3745_v45 = vld [vmem:[%s3442_s25 + $0x1b8] sm:$0xff]  ;;  %v4132_v28 = vld [vmem:[#allocation18_spill] sm:$0xff] }
 0x2c4   : > { %4129 = vst [vmem:[#allocation68_spill] sm:$0xff] %v3739_v54  ;;  %4130 = vst [vmem:[#allocation69_spill] sm:$0xff] %v3742_v52  ;;  %v3749_v53 = vmul.f32 %v3435_v32, %v4132_v28  ;;  %v3758_v54 = vld [vmem:[%s3442_s25 + $0x1f0] sm:$0xff]  ;;  %v4133_v52 = vld [vmem:[#allocation23_spill] sm:$0xff] }
 0x2c5   : > { %4131 = vst [vmem:[#allocation70_spill] sm:$0xff] %v3745_v45  ;;  %v3762_v39 = vmul.f32 %v3495_v20, %v4133_v52  ;;  %v4134_v45 = vld [vmem:[#allocation25_spill] sm:$0xff]  ;;  %v4135_v28 = vld [vmem:[#allocation24_spill] sm:$0xff]  ;;  %v1557_v52 = vadd.f32 %v3447_v16, %v3572_v25  ;;  %v1561_v16 = vadd.f32 %v3468_v27, %v3595_v29 }
 0x2c6   : > { %v3766_v32 = vmul.f32 %v3495_v20, %v4134_v45  ;;  %v1559_v45 = vadd.f32 %v3453_v7, %v3578_v34  ;;  %v1563_v7 = vadd.f32 %v3474_v57, %v3601_v9  ;;  %v1565_v57 = vadd.f32 %v3500_v10, %v3607_v31 }
 0x2c7   : > { %v1567_v9 = vadd.f32 %v3506_v24, %v3613_v62  ;;  %v1569_v10 = vadd.f32 %v3512_v26, %v3619_v6  ;;  %v4140_v62 = vld [vmem:[#allocation20_spill] sm:$0xff]  ;;  %v4141_v6 = vld [vmem:[#allocation22_spill] sm:$0xff] }
 0x2f4   : > { %v1616_v51 = vpop.permute.xlu1 %1615 }
 0x2f5   : > { %v1658_v50 = vadd.f32 %v1616_v51, %v3479_v46  ;;  %v1659_v59 = vadd.f32 %v1616_v51, %v3481_v36  ;;  %v1660_v0 = vadd.f32 %v1616_v51, %v3535_v40  ;;  %v1661_v38 = vadd.f32 %v1616_v51, %v3537_v8  ;;  %v3752_v40 = vld [vmem:[%s3442_s25 + $0x1e0] sm:$0xff]  ;;  %v3755_v8 = vld [vmem:[%s3442_s25 + $0x1e8] sm:$0xff] }
 0x2f6   : > { %v1662_v46 = vadd.f32 %v1616_v51, %v1554_v37  ;;  %v1663_v36 = vadd.f32 %v1616_v51, %v1555_v23  ;;  %v1664_v17 = vadd.f32 %v1616_v51, %v1556_v35  ;;  %v3770_v51 = vmul.f32 %v3495_v20, %v4135_v28  ;;  %v4136_v37 = vld [vmem:[#allocation5_spill] sm:$0xff] }
 0x2f7   : > { %v3774_v23 = vmul.f32 %v3455_v42, %v4136_v37  ;;  %1721 = vst [vmem:[%s3588_s28] sm:$0xff] %v1658_v50  ;;  %1722 = vst [vmem:[%s3588_s28 + $0x8] sm:$0xff] %v1659_v59  ;;  %v1558_v35 = vadd.f32 %v3450_v15, %v3575_v41  ;;  %v1560_v20 = vadd.f32 %v3463_v5, %v3581_v13  ;;  %v4137_v50 = vld [vmem:[#allocation7_spill] sm:$0xff]  ;;  %v4138_v41 = vld [vmem:[#allocation6_spill] sm:$0xff] }
 0x2f8   : > { %1723 = vst [vmem:[%s3588_s28 + $0x10] sm:$0xff] %v1660_v0  ;;  %1724 = vst [vmem:[%s3588_s28 + $0x18] sm:$0xff] %v1661_v38  ;;  %v3794_v0 = vmul.f32 %v3455_v42, %v4137_v50  ;;  %v1562_v15 = vadd.f32 %v3471_v4, %v3598_v14  ;;  %v3804_v34 = vmul.f32 %v3455_v42, %v4138_v41  ;;  %v4142_v37 = vld [vmem:[#allocation21_spill] sm:$0xff]  ;;  %v4153_v41 = vld [vmem:[#allocation36_spill] sm:$0xff] }
 0x2f9   : > { %1725 = vst [vmem:[%s3588_s28 + $0x20] sm:$0xff] %v1662_v46  ;;  %1726 = vst [vmem:[%s3588_s28 + $0x28] sm:$0xff] %v1663_v36  ;;  %v1564_v4 = vadd.f32 %v3484_v58, %v3604_v11  ;;  %v1566_v14 = vadd.f32 %v3503_v47, %v3610_v43  ;;  %v4139_v46 = vld [vmem:[#allocation8_spill] sm:$0xff]  ;;  %v1568_v58 = vadd.f32 %v3509_v22, %v3616_v12 }
 0x2fa   : > { %1727 = vst.msk [vmem:[%s3588_s28 + $0x30] sm:$0xff] %vm1023_vm1, %v1664_v17  ;;  %v1621_v38 = vpop.permute.xlu0 %1620  ;;  %v3820_v36 = vmul.f32 %v3455_v42, %v4139_v46  ;;  %v1570_v47 = vadd.f32 %v3515_v21, %v3622_v61  ;;  %v3834_v22 = vmul.f32 %v3455_v42, %v4140_v62  ;;  %v3838_v61 = vmul.f32 %v3455_v42, %v4141_v6  ;;  %v4159_v6 = vld [vmem:[#allocation10_spill] sm:$0xff] }
 0x2fb   : > { %v1665_v5 = vadd.f32 %v1621_v38, %v1557_v52  ;;  %v1666_v17 = vadd.f32 %v1621_v38, %v1558_v35  ;;  %v1667_v59 = vadd.f32 %v1621_v38, %v1559_v45  ;;  %v1668_v25 = vadd.f32 %v1621_v38, %v1560_v20  ;;  %v4143_v35 = vld [vmem:[#allocation9_spill] sm:$0xff] }
 0x2fc   : > { %v1669_v13 = vadd.f32 %v1621_v38, %v1561_v16  ;;  %v1670_v27 = vadd.f32 %v1621_v38, %v1562_v15  ;;  %v1671_v29 = vadd.f32 %v1621_v38, %v1563_v7  ;;  %v3842_v52 = vmul.f32 %v3455_v42, %v4142_v37 }
 0x2fd   : > { %1728 = vst [vmem:[%s3588_s28 + $0x38] sm:$0xff] %v1665_v5  ;;  %1729 = vst [vmem:[%s3588_s28 + $0x40] sm:$0xff] %v1666_v17  ;;  %v3846_v45 = vmul.f32 %v3523_v49, %v4143_v35  ;;  %v1571_v20 = vadd.f32 %v3541_v48, %v3625_v19  ;;  %v1572_v50 = vadd.f32 %v3557_v56, %v3628_v63  ;;  %v4144_v56 = vld [vmem:[#allocation3_spill] sm:$0xff]  ;;  %v4145_v63 = vld [vmem:[#allocation32_spill] sm:$0xff] }
 0x2fe   : > { %1730 = vst [vmem:[%s3588_s28 + $0x48] sm:$0xff] %v1667_v59  ;;  %1731 = vst [vmem:[%s3588_s28 + $0x50] sm:$0xff] %v1668_v25  ;;  %v1626_v28 = vpop.permute.xlu1 %1625  ;;  %v1573_v38 = vadd.f32 %v3561_v30, %v3631_v44  ;;  %v1574_v42 = vadd.f32 %v3565_v55, %v3634_v1  ;;  %v1575_v16 = vadd.f32 %v3569_v2, %v3637_v60  ;;  %v4146_v30 = vld [vmem:[#allocation2_spill] sm:$0xff]  ;;  %v4147_v44 = vld [vmem:[#allocation33_spill] sm:$0xff] }
 0x2ff   : > { %1732 = vst [vmem:[%s3588_s28 + $0x58] sm:$0xff] %v1669_v13  ;;  %1733 = vst [vmem:[%s3588_s28 + $0x60] sm:$0xff] %v1670_v27  ;;  %v1672_v24 = vadd.f32 %v1626_v28, %v1564_v4  ;;  %v1673_v11 = vadd.f32 %v1626_v28, %v1565_v57  ;;  %v1674_v31 = vadd.f32 %v1626_v28, %v1566_v14  ;;  %v4148_v1 = vld [vmem:[#allocation4_spill] sm:$0xff]  ;;  %v4149_v5 = vld [vmem:[#allocation34_spill] sm:$0xff] }
 0x300   : > { %1734 = vst.msk [vmem:[%s3588_s28 + $0x68] sm:$0xff] %vm1023_vm1, %v1671_v29  ;;  %v1675_v43 = vadd.f32 %v1626_v28, %v1567_v9  ;;  %v1676_v26 = vadd.f32 %v1626_v28, %v1568_v58  ;;  %v1677_v21 = vadd.f32 %v1626_v28, %v1569_v10  ;;  %v1678_v12 = vadd.f32 %v1626_v28, %v1570_v47  ;;  %v4150_v60 = vld [vmem:[#allocation17_spill] sm:$0xff]  ;;  %v4151_v17 = vld [vmem:[#allocation35_spill] sm:$0xff]  ;;  %v4156_v28 = vld [vmem:[#allocation44_spill] sm:$0xff] }
 0x301   : > { %1735 = vst [vmem:[%s3588_s28 + $0x70] sm:$0xff] %v1672_v24  ;;  %1736 = vst [vmem:[%s3588_s28 + $0x78] sm:$0xff] %v1673_v11  ;;  %v1576_v48 = vadd.f32 %v3592_v33, %v3640_v18  ;;  %v1577_v19 = vadd.f32 %v3749_v53, %v3643_v3  ;;  %v1578_v15 = vadd.f32 %v4145_v63, %v4144_v56  ;;  %v4152_v25 = vld [vmem:[#allocation19_spill] sm:$0xff]  ;;  %v4155_v13 = vld [vmem:[#allocation37_spill] sm:$0xff] }
 0x302   : > { %1737 = vst [vmem:[%s3588_s28 + $0x80] sm:$0xff] %v1674_v31  ;;  %1738 = vst [vmem:[%s3588_s28 + $0x88] sm:$0xff] %v1675_v43  ;;  %v1579_v7 = vadd.f32 %v4147_v44, %v4146_v30  ;;  %v1580_v2 = vadd.f32 %v4149_v5, %v4148_v1  ;;  %v1581_v59 = vadd.f32 %v4151_v17, %v4150_v60  ;;  %v4154_v18 = vld [vmem:[#allocation43_spill] sm:$0xff]  ;;  %v4157_v58 = vld [vmem:[#allocation38_spill] sm:$0xff] }
 0x303   : > { %1739 = vst [vmem:[%s3588_s28 + $0x90] sm:$0xff] %v1676_v26  ;;  %1740 = vst [vmem:[%s3588_s28 + $0x98] sm:$0xff] %v1677_v21  ;;  %v1582_v33 = vadd.f32 %v4153_v41, %v4152_v25  ;;  %v1583_v53 = vadd.f32 %v4155_v13, %v4154_v18  ;;  %v1584_v10 = vadd.f32 %v4157_v58, %v4156_v28  ;;  %v4158_v43 = vld [vmem:[#allocation11_spill] sm:$0xff]  ;;  %v4160_v35 = vld [vmem:[#allocation12_spill] sm:$0xff] }
 0x304   : > { %1741 = vst.msk [vmem:[%s3588_s28 + $0xa0] sm:$0xff] %vm1023_vm1, %v1678_v12  ;;  %v1631_v55 = vpop.permute.xlu1 %1630  ;;  %v3890_v62 = vmul.f32 %v3523_v49, %v4158_v43  ;;  %v3898_v37 = vmul.f32 %v3523_v49, %v4159_v6  ;;  %v4164_v56 = vld [vmem:[#allocation47_spill] sm:$0xff]  ;;  %v4166_v44 = vld [vmem:[#allocation49_spill] sm:$0xff]  ;;  %v4172_v17 = vld [vmem:[#allocation40_spill] sm:$0xff] }
 0x305   : > { %v1679_v3 = vadd.f32 %v1631_v55, %v1571_v20  ;;  %v1680_v27 = vadd.f32 %v1631_v55, %v1572_v50  ;;  %v1681_v29 = vadd.f32 %v1631_v55, %v1573_v38  ;;  %v1682_v4 = vadd.f32 %v1631_v55, %v1574_v42  ;;  %v4161_v50 = vld [vmem:[#allocation26_spill] sm:$0xff]  ;;  %v4162_v42 = vld [vmem:[#allocation45_spill] sm:$0xff]  ;;  %v4168_v1 = vld [vmem:[#allocation51_spill] sm:$0xff] }
 0x306   : > { %v1683_v57 = vadd.f32 %v1631_v55, %v1575_v16  ;;  %v1684_v14 = vadd.f32 %v1631_v55, %v1576_v48  ;;  %v1685_v9 = vadd.f32 %v1631_v55, %v1577_v19  ;;  %v1636_v46 = vpop.permute.xlu0 %1635  ;;  %v3902_v20 = vmul.f32 %v3523_v49, %v4160_v35  ;;  %v4163_v48 = vld [vmem:[#allocation46_spill] sm:$0xff]  ;;  %v4174_v41 = vld [vmem:[#allocation41_spill] sm:$0xff]  ;;  %v4183_v35 = vld [vmem:[#allocation15_spill] sm:$0xff] }
 0x307   : > { %v1686_v47 = vadd.f32 %v1636_v46, %v1578_v15  ;;  %v1687_v24 = vadd.f32 %v1636_v46, %v1579_v7  ;;  %v1688_v11 = vadd.f32 %v1636_v46, %v1580_v2  ;;  %v1689_v31 = vadd.f32 %v1636_v46, %v1581_v59  ;;  %1742 = vst [vmem:[%s3588_s28 + $0xa8] sm:$0xff] %v1679_v3  ;;  %v4165_v15 = vld [vmem:[#allocation48_spill] sm:$0xff]  ;;  %v4170_v2 = vld [vmem:[#allocation39_spill] sm:$0xff]  ;;  %v4173_v25 = vld [vmem:[#allocation54_spill] sm:$0xff] }
 0x308   : > { %1743 = vst [vmem:[%s3588_s28 + $0xb0] sm:$0xff] %v1680_v27  ;;  %1744 = vst [vmem:[%s3588_s28 + $0xb8] sm:$0xff] %v1681_v29  ;;  %v1690_v26 = vadd.f32 %v1636_v46, %v1582_v33  ;;  %v1691_v21 = vadd.f32 %v1636_v46, %v1583_v53  ;;  %v1692_v12 = vadd.f32 %v1636_v46, %v1584_v10  ;;  %v4175_v33 = vld [vmem:[#allocation55_spill] sm:$0xff]  ;;  %v4176_v18 = vld [vmem:[#allocation42_spill] sm:$0xff] }
 0x309   : > { %1745 = vst [vmem:[%s3588_s28 + $0xc0] sm:$0xff] %v1682_v4  ;;  %1746 = vst [vmem:[%s3588_s28 + $0xc8] sm:$0xff] %v1683_v57  ;;  %v3906_v38 = vmul.f32 %v3523_v49, %v4161_v50  ;;  %v1585_v16 = vadd.f32 %v3774_v23, %v4162_v42  ;;  %v1586_v19 = vadd.f32 %v3794_v0, %v4163_v48  ;;  %v4167_v23 = vld [vmem:[#allocation50_spill] sm:$0xff]  ;;  %v4169_v0 = vld [vmem:[#allocation52_spill] sm:$0xff] }
 0x30a   : > { %1747 = vst [vmem:[%s3588_s28 + $0xd0] sm:$0xff] %v1684_v14  ;;  %1748 = vst.msk [vmem:[%s3588_s28 + $0xd8] sm:$0xff] %vm1023_vm1, %v1685_v9  ;;  %v1587_v63 = vadd.f32 %v3804_v34, %v4164_v56  ;;  %v1588_v30 = vadd.f32 %v3820_v36, %v4165_v15  ;;  %v1589_v7 = vadd.f32 %v3834_v22, %v4166_v44  ;;  %v4171_v34 = vld [vmem:[#allocation53_spill] sm:$0xff]  ;;  %v4177_v53 = vld [vmem:[#allocation56_spill] sm:$0xff] }
 0x30b   : > { %1749 = vst [vmem:[%s3588_s28 + $0xe0] sm:$0xff] %v1686_v47  ;;  %1750 = vst [vmem:[%s3588_s28 + $0xe8] sm:$0xff] %v1687_v24  ;;  %v1590_v55 = vadd.f32 %v3838_v61, %v4167_v23  ;;  %v1591_v5 = vadd.f32 %v3842_v52, %v4168_v1  ;;  %v1592_v60 = vadd.f32 %v4170_v2, %v4169_v0  ;;  %v4178_v3 = vld [vmem:[#allocation57_spill] sm:$0xff]  ;;  %v4179_v58 = vld [vmem:[#allocation58_spill] sm:$0xff] }
 0x30c   : > { %1751 = vst [vmem:[%s3588_s28 + $0xf0] sm:$0xff] %v1688_v11  ;;  %1752 = vst [vmem:[%s3588_s28 + $0xf8] sm:$0xff] %v1689_v31  ;;  %v1593_v59 = vadd.f32 %v4172_v17, %v4171_v34  ;;  %v1641_v36 = vpop.permute.xlu1 %1640  ;;  %v1594_v22 = vadd.f32 %v4174_v41, %v4173_v25  ;;  %v1595_v13 = vadd.f32 %v4176_v18, %v4175_v33  ;;  %v4180_v11 = vld [vmem:[#allocation28_spill] sm:$0xff]  ;;  %v4184_v42 = vld [vmem:[#allocation14_spill] sm:$0xff] }
 0x30d   : > { %1753 = vst [vmem:[%s3588_s28 + $0x100] sm:$0xff] %v1690_v26  ;;  %1754 = vst [vmem:[%s3588_s28 + $0x108] sm:$0xff] %v1691_v21  ;;  %v1596_v61 = vadd.f32 %v3762_v39, %v4177_v53  ;;  %v1597_v52 = vadd.f32 %v3766_v32, %v4178_v3  ;;  %v1693_v27 = vadd.f32 %v1641_v36, %v1585_v16  ;;  %v4185_v48 = vld [vmem:[#allocation16_spill] sm:$0xff]  ;;  %v4186_v56 = vld [vmem:[#allocation29_spill] sm:$0xff] }
 0x30e   : > { %1755 = vst.msk [vmem:[%s3588_s28 + $0x110] sm:$0xff] %vm1023_vm1, %v1692_v12  ;;  %v1694_v29 = vadd.f32 %v1641_v36, %v1586_v19  ;;  %v1695_v4 = vadd.f32 %v1641_v36, %v1587_v63  ;;  %v1696_v57 = vadd.f32 %v1641_v36, %v1588_v30  ;;  %v1697_v14 = vadd.f32 %v1641_v36, %v1589_v7  ;;  %v1646_v28 = vpop.permute.xlu0 %1645  ;;  %v4182_v12 = vld [vmem:[#allocation67_spill] sm:$0xff]  ;;  %v4188_v44 = vld [vmem:[#allocation30_spill] sm:$0xff]  ;;  %v4191_v0 = vld [vmem:[#allocation60_spill] sm:$0xff] }
 0x30f   : > { %v1698_v9 = vadd.f32 %v1641_v36, %v1590_v55  ;;  %v1699_v46 = vadd.f32 %v1641_v36, %v1591_v5  ;;  %v1598_v39 = vadd.f32 %v3770_v51, %v4179_v58  ;;  %v1700_v10 = vadd.f32 %v1646_v28, %v1592_v60  ;;  %1756 = vst [vmem:[%s3588_s28 + $0x118] sm:$0xff] %v1693_v27  ;;  %v4181_v51 = vld [vmem:[#allocation13_spill] sm:$0xff]  ;;  %v4187_v15 = vld [vmem:[#allocation31_spill] sm:$0xff]  ;;  %v4193_v17 = vld [vmem:[#allocation62_spill] sm:$0xff] }
 0x310   : > { %v1701_v47 = vadd.f32 %v1646_v28, %v1593_v59  ;;  %v1702_v24 = vadd.f32 %v1646_v28, %v1594_v22  ;;  %v1703_v32 = vadd.f32 %v1646_v28, %v1595_v13  ;;  %1757 = vst [vmem:[%s3588_s28 + $0x120] sm:$0xff] %v1694_v29  ;;  %1758 = vst [vmem:[%s3588_s28 + $0x128] sm:$0xff] %v1695_v4  ;;  %v4189_v23 = vld [vmem:[#allocation27_spill] sm:$0xff]  ;;  %v4192_v60 = vld [vmem:[#allocation61_spill] sm:$0xff] }
 0x311   : > { %1759 = vst [vmem:[%s3588_s28 + $0x130] sm:$0xff] %v1696_v57  ;;  %v1541_v31 = vmul.f32 %v3523_v49, %v4180_v11  ;;  %v1704_v43 = vadd.f32 %v1646_v28, %v1596_v61  ;;  %v1705_v26 = vadd.f32 %v1646_v28, %v1597_v52  ;;  %v1706_v21 = vadd.f32 %v1646_v28, %v1598_v39  ;;  %v4190_v1 = vld [vmem:[#allocation59_spill] sm:$0xff]  ;;  %v4194_v36 = vld [vmem:[#allocation68_spill] sm:$0xff]  ;;  %v4198_v53 = vld [vmem:[#allocation65_spill] sm:$0xff] }
 0x312   : > { %1760 = vst [vmem:[%s3588_s28 + $0x138] sm:$0xff] %v1697_v14  ;;  %1761 = vst [vmem:[%s3588_s28 + $0x140] sm:$0xff] %v1698_v9  ;;  %v1543_v6 = vmul.f32 %v4182_v12, %v4181_v51  ;;  %v1544_v50 = vmul.f32 %v4182_v12, %v4183_v35  ;;  %v1545_v16 = vmul.f32 %v4182_v12, %v4184_v42  ;;  %v4196_v22 = vld [vmem:[#allocation63_spill] sm:$0xff]  ;;  %v4197_v18 = vld [vmem:[#allocation64_spill] sm:$0xff] }
 0x313   : > { %1762 = vst.msk [vmem:[%s3588_s28 + $0x148] sm:$0xff] %vm1023_vm1, %v1699_v46  ;;  %v1546_v19 = vmul.f32 %v4182_v12, %v4185_v48  ;;  %1763 = vst [vmem:[%s3588_s28 + $0x150] sm:$0xff] %v1700_v10  ;;  %v1547_v63 = vmul.f32 %v4182_v12, %v4186_v56  ;;  %v1548_v30 = vmul.f32 %v4182_v12, %v4187_v15  ;;  %v4199_v61 = vld [vmem:[#allocation66_spill] sm:$0xff] }
 0x314   : > { %1764 = vst [vmem:[%s3588_s28 + $0x158] sm:$0xff] %v1701_v47  ;;  %1765 = vst [vmem:[%s3588_s28 + $0x160] sm:$0xff] %v1702_v24  ;;  %v1549_v7 = vmul.f32 %v4182_v12, %v4188_v44  ;;  %v1542_v55 = vmul.f32 %v3523_v49, %v4189_v23  ;;  %v1599_v5 = vadd.f32 %v3846_v45, %v4190_v1  ;;  %v4195_v49 = vld [vmem:[#allocation69_spill] sm:$0xff] }
 0x315   : > { %1766 = vst [vmem:[%s3588_s28 + $0x168] sm:$0xff] %v1703_v32  ;;  %1767 = vst [vmem:[%s3588_s28 + $0x170] sm:$0xff] %v1704_v43  ;;  %v1600_v2 = vadd.f32 %v3890_v62, %v4191_v0  ;;  %v1601_v34 = vadd.f32 %v3898_v37, %v4192_v60  ;;  %v1602_v59 = vadd.f32 %v3902_v20, %v4193_v17  ;;  %v4200_v62 = vld [vmem:[#allocation70_spill] sm:$0xff] }
 0x316   : > { %1768 = vst [vmem:[%s3588_s28 + $0x178] sm:$0xff] %v1705_v26  ;;  %1769 = vst.msk [vmem:[%s3588_s28 + $0x180] sm:$0xff] %vm1023_vm1, %v1706_v21  ;;  %v1603_v25 = vadd.f32 %v3906_v38, %v4194_v36  ;;  %v1604_v41 = vadd.f32 %v1541_v31, %v4195_v49  ;;  %v1606_v33 = vadd.f32 %v1543_v6, %v4196_v22  ;;  %v1656_v27 = vpop.permute.xlu0 %1655 }
 0x317   : > { %v1607_v13 = vadd.f32 %v1544_v50, %v4197_v18  ;;  %v1608_v45 = vadd.f32 %v1545_v16, %v4198_v53  ;;  %v1609_v3 = vadd.f32 %v1546_v19, %v4199_v61  ;;  %v1605_v52 = vadd.f32 %v1542_v55, %v4200_v62  ;;  %v1651_v29 = vpop.permute.xlu1 %1650 }
 0x318   : > { %v1610_v37 = vadd.f32 %v1547_v63, %v3752_v40  ;;  %v1611_v20 = vadd.f32 %v1548_v30, %v3755_v8  ;;  %v1612_v38 = vadd.f32 %v1549_v7, %v3758_v54  ;;  %v1714_v4 = vadd.f32 %v1656_v27, %v1606_v33 }
 0x319   : > { %v1715_v57 = vadd.f32 %v1656_v27, %v1607_v13  ;;  %v1716_v14 = vadd.f32 %v1656_v27, %v1608_v45  ;;  %v1717_v9 = vadd.f32 %v1656_v27, %v1609_v3  ;;  %v1707_v46 = vadd.f32 %v1651_v29, %v1599_v5 }
 0x31a   : > { %v1708_v28 = vadd.f32 %v1651_v29, %v1600_v2  ;;  %v1709_v40 = vadd.f32 %v1651_v29, %v1601_v34  ;;  %v1710_v58 = vadd.f32 %v1651_v29, %v1602_v59  ;;  %v1711_v8 = vadd.f32 %v1651_v29, %v1603_v25  ;;  %1777 = vst [vmem:[%s3588_s28 + $0x1c0] sm:$0xff] %v1714_v4 }
 0x31b   : > { %v1712_v54 = vadd.f32 %v1651_v29, %v1604_v41  ;;  %v1713_v39 = vadd.f32 %v1651_v29, %v1605_v52  ;;  %v1718_v10 = vadd.f32 %v1656_v27, %v1610_v37  ;;  %1778 = vst [vmem:[%s3588_s28 + $0x1c8] sm:$0xff] %v1715_v57  ;;  %1779 = vst [vmem:[%s3588_s28 + $0x1d0] sm:$0xff] %v1716_v14 }
 0x31c   : > { %1780 = vst [vmem:[%s3588_s28 + $0x1d8] sm:$0xff] %v1717_v9  ;;  %v1719_v47 = vadd.f32 %v1656_v27, %v1611_v20  ;;  %v1720_v24 = vadd.f32 %v1656_v27, %v1612_v38  ;;  %1770 = vst [vmem:[%s3588_s28 + $0x188] sm:$0xff] %v1707_v46 }
 0x31d   : > { %1771 = vst [vmem:[%s3588_s28 + $0x190] sm:$0xff] %v1708_v28  ;;  %1772 = vst [vmem:[%s3588_s28 + $0x198] sm:$0xff] %v1709_v40 }
 0x31e   : > { %1773 = vst [vmem:[%s3588_s28 + $0x1a0] sm:$0xff] %v1710_v58  ;;  %1774 = vst [vmem:[%s3588_s28 + $0x1a8] sm:$0xff] %v1711_v8 }
 0x31f   : > { %1775 = vst [vmem:[%s3588_s28 + $0x1b0] sm:$0xff] %v1712_v54  ;;  %1776 = vst.msk [vmem:[%s3588_s28 + $0x1b8] sm:$0xff] %vm1023_vm1, %v1713_v39 }
 0x320   : > { %1781 = vst [vmem:[%s3588_s28 + $0x1e0] sm:$0xff] %v1718_v10  ;;  %1782 = vst [vmem:[%s3588_s28 + $0x1e8] sm:$0xff] %v1719_v47 }
 0x321   : > { %1783 = vst.msk [vmem:[%s3588_s28 + $0x1f0] sm:$0xff] %vm1023_vm1, %v1720_v24 }
 0x322 PF: > { %s15_s18 = sadd.s32 1, %s2157_s18  }
 0x323   : > { %p12_p4 = scmp.ge.s32.totalorder %s15_s18, 5  }
 0x325   :  { %14 = sbr.rel (!%p12_p4) target bundleno = 1 (0x1), region = 76 }

</bundles_post_ra>
